<compile_context>
chip_gen: v7x
topology: tpu7x:2x2x1
jax: 0.10.0
libtpu: 0.0.40
codegen_flags: <defaults>
</compile_context>

<pallas_src>
import jax
import jax.numpy as jnp
from jax.experimental import pallas as pl
from jax.experimental.pallas import tpu as pltpu

LATENT_DIM = 8
PARAM_DIM = 4
HIDDEN_DIM = LATENT_DIM * PARAM_DIM  # fc3 output / fc4 input

IN_DIM = 784
H1 = 512
H2 = 256

LAYER_DIMS = [
    (IN_DIM, H1),       # fc1
    (H1, H2),           # fc2
    (H2, HIDDEN_DIM),   # fc3
    (HIDDEN_DIM, H2),   # fc4
    (H2, H1),           # fc5
    (H1, IN_DIM),       # fc6
]


def _round_up(n, m):
    return ((n + m - 1) // m) * m


def _ae_forward_kernel(x_ref,
                       w1_ref, b1_ref, w2_ref, b2_ref,
                       w34_ref, b34_ref,
                       w5_ref, b5_ref, w6_ref, b6_ref,
                       recon_ref):
    """Fused 5-matmul MLP autoencoder forward on one batch tile.

    Weights/activations are bf16 (native MXU path on v5e/v6e/v7x); all matmuls
    accumulate in f32 via preferred_element_type. ReLU runs on the VPU; the
    sigmoid epilogue uses EUP exp + approx reciprocal.
    """
    # In-kernel f32 -> bf16 cast (input tile arrives f32; wrapper does no cast pass).
    x = x_ref[...].astype(jnp.bfloat16)  # (tb, 784)

    # ---- encode ----
    h = jnp.dot(x, w1_ref[...], preferred_element_type=jnp.float32) + b1_ref[...]
    h = jnp.maximum(h, 0.0).astype(jnp.bfloat16)
    h = jnp.dot(h, w2_ref[...], preferred_element_type=jnp.float32) + b2_ref[...]
    h = jnp.maximum(h, 0.0).astype(jnp.bfloat16)

    # ---- folded fc3 + fc4 bottleneck (latent pass-through) ----
    # relu(fc4(fc3(h2))) == relu(h2 @ (W3@W4) + (b3@W4 + b4)); no relu sits between fc3/fc4.
    h = jnp.dot(h, w34_ref[...], preferred_element_type=jnp.float32) + b34_ref[...]
    h = jnp.maximum(h, 0.0).astype(jnp.bfloat16)

    # ---- decode ----
    h = jnp.dot(h, w5_ref[...], preferred_element_type=jnp.float32) + b5_ref[...]
    h = jnp.maximum(h, 0.0).astype(jnp.bfloat16)
    logits = jnp.dot(h, w6_ref[...], preferred_element_type=jnp.float32) + b6_ref[...]

    # sigmoid(z) = 1 / (1 + exp(-z)): exp + approx reciprocal both run on the EUP slot.
    recon = pl.reciprocal(1.0 + jnp.exp(-logits), approx=True)
    recon_ref[...] = recon.astype(recon_ref.dtype)


def init_params(key):
    """PyTorch-style (uniform +/- 1/sqrt(fan_in)) deterministic init.

    Weights stored (in_features, out_features) in bf16; biases (1, out_features) in f32.
    """
    params = []
    for (fan_in, fan_out) in LAYER_DIMS:
        key, kw, kb = jax.random.split(key, 3)
        bound = 1.0 / jnp.sqrt(float(fan_in))
        w = jax.random.uniform(kw, (fan_in, fan_out), jnp.float32, -bound, bound)
        b = jax.random.uniform(kb, (1, fan_out), jnp.float32, -bound, bound)
        params += [w.astype(jnp.bfloat16), b]
    return params


def _fuse_bottleneck(params):
    """Fold fc3/fc4 into one (256,256) layer (valid while latent()/embed() are identity)."""
    w1, b1, w2, b2, w3, b3, w4, b4, w5, b5, w6, b6 = params
    w4_f32 = w4.astype(jnp.float32)
    w34 = jnp.dot(w3.astype(jnp.float32), w4_f32).astype(jnp.bfloat16)   # (256, 256) bf16
    b34 = jnp.dot(b3, w4_f32) + b4                                       # (1, 256) f32
    return (w1, b1, w2, b2, w34, b34, w5, b5, w6, b6)


def _choose_tile(b, tile_b):
    """Batch tile: multiple of 16, capped at tile_b, and >= 2 grid steps when batch allows
    (so v7x's two TensorCores both get work). tile_b should be a multiple of 16.
    On v5e/v6e (128 MiB VMEM) tile_b=1024 with vmem_limit_bytes=64 MiB is also viable;
    keep tile_b<=512 on v7x (64 MiB physical VMEM)."""
    tb = min(tile_b, _round_up(b, 16))
    if b > 16:
        tb = min(tb, _round_up(-(-b // 2), 16))
    return max(tb, 16)


def categorical_autoencoder_forward(x_nchw, params, tile_b=512, out_dtype=jnp.bfloat16):
    """x_nchw: (B, 1, 28, 28) float32.  Returns ((B, 1, 28, 28) out_dtype recon, None)."""
    b = x_nchw.shape[0]
    x = x_nchw.reshape(b, IN_DIM)                  # f32; cast happens inside the kernel
    fused = _fuse_bottleneck(params)

    tb = _choose_tile(b, tile_b)
    grid = (pl.cdiv(b, tb),)                       # partial edge block handled by Pallas

    # Weights/biases stay VMEM-resident across the batch grid (constant index_map).
    resident = lambda arr: pl.BlockSpec(arr.shape, lambda i: (0, 0))
    in_specs = [pl.BlockSpec((tb, IN_DIM), lambda i: (i, 0))] + [resident(p) for p in fused]
    out_specs = pl.BlockSpec((tb, IN_DIM), lambda i: (i, 0))

    recon = pl.pallas_call(
        _ae_forward_kernel,
        out_shape=jax.ShapeDtypeStruct((b, IN_DIM), out_dtype),
        grid=grid,
        in_specs=in_specs,
        out_specs=out_specs,
        compiler_params=pltpu.CompilerParams(
            dimension_semantics=("parallel",),      # shard batch tiles across v7x's 2 TCs
            vmem_limit_bytes=32 * 1024 * 1024,      # fits every generation (v7x has 64 MiB)
        ),
    )(x, *fused)

    recon = recon.reshape(b, 1, 28, 28)
    prior_loss = None
    return recon, prior_loss


def _reference_forward(x_nchw, params, out_dtype=jnp.bfloat16):
    """Pure-JAX reference (same dtypes / same fc3-fc4 fold) for a correctness check."""
    b = x_nchw.shape[0]
    w1, b1, w2, b2, w34, b34, w5, b5, w6, b6 = _fuse_bottleneck(params)
    dot = lambda a, w: jnp.dot(a, w, preferred_element_type=jnp.float32)
    h = x_nchw.reshape(b, IN_DIM).astype(jnp.bfloat16)
    h = jnp.maximum(dot(h, w1) + b1, 0.0).astype(jnp.bfloat16)
    h = jnp.maximum(dot(h, w2) + b2, 0.0).astype(jnp.bfloat16)
    h = jnp.maximum(dot(h, w34) + b34, 0.0).astype(jnp.bfloat16)
    h = jnp.maximum(dot(h, w5) + b5, 0.0).astype(jnp.bfloat16)
    logits = dot(h, w6) + b6
    return jax.nn.sigmoid(logits).astype(out_dtype).reshape(b, 1, 28, 28)


if __name__ == "__main__":
    key = jax.random.PRNGKey(0)
    key, kx = jax.random.split(key)

    B = 32  # multiple of 16 -> two full batch tiles (exercises the multi-step grid)
    x = jax.random.uniform(kx, (B, 1, 28, 28), jnp.float32)  # MNIST-like input
    params = init_params(key)

    recon, prior_loss = categorical_autoencoder_forward(x, params)
    recon = jax.block_until_ready(recon)

    ref = jax.block_until_ready(_reference_forward(x, params))
    assert recon.shape == (B, 1, 28, 28)
    assert recon.dtype == jnp.bfloat16
    assert prior_loss is None
    err = jnp.max(jnp.abs(recon.astype(jnp.float32) - ref.astype(jnp.float32)))
    assert err < 1e-2, float(err)

    print("KERNEL_OK")
</pallas_src>

<mosaic_0001>
module attributes {stable_mosaic.version = 11 : i64} {
  func.func @_ae_forward_kernel(%arg0: i32, %arg1: memref<16x784xf32, #tpu.memory_space<vmem>>, %arg2: memref<784x512xbf16, #tpu.memory_space<vmem>>, %arg3: memref<1x512xf32, #tpu.memory_space<vmem>>, %arg4: memref<512x256xbf16, #tpu.memory_space<vmem>>, %arg5: memref<1x256xf32, #tpu.memory_space<vmem>>, %arg6: memref<256x256xbf16, #tpu.memory_space<vmem>>, %arg7: memref<1x256xf32, #tpu.memory_space<vmem>>, %arg8: memref<256x512xbf16, #tpu.memory_space<vmem>>, %arg9: memref<1x512xf32, #tpu.memory_space<vmem>>, %arg10: memref<512x784xbf16, #tpu.memory_space<vmem>>, %arg11: memref<1x784xf32, #tpu.memory_space<vmem>>, %arg12: memref<16x784xbf16, #tpu.memory_space<vmem>>) attributes {dimension_semantics = [#tpu.dimension_semantics<parallel>], iteration_bounds = array<i64: 2>, scalar_prefetch = 0 : i64, scratch_operands = 0 : i64, tpu.core_type = #tpu.core_type<tc>, window_params = [{transform_indices = @transform_0, window_bounds = array<i64: 16, 784>}, {pipeline_mode = #tpu.pipeline_mode<synchronous>, transform_indices = @transform_1, window_bounds = array<i64: 784, 512>}, {pipeline_mode = #tpu.pipeline_mode<synchronous>, transform_indices = @transform_2, window_bounds = array<i64: 1, 512>}, {pipeline_mode = #tpu.pipeline_mode<synchronous>, transform_indices = @transform_3, window_bounds = array<i64: 512, 256>}, {pipeline_mode = #tpu.pipeline_mode<synchronous>, transform_indices = @transform_4, window_bounds = array<i64: 1, 256>}, {pipeline_mode = #tpu.pipeline_mode<synchronous>, transform_indices = @transform_5, window_bounds = array<i64: 256, 256>}, {pipeline_mode = #tpu.pipeline_mode<synchronous>, transform_indices = @transform_6, window_bounds = array<i64: 1, 256>}, {pipeline_mode = #tpu.pipeline_mode<synchronous>, transform_indices = @transform_7, window_bounds = array<i64: 256, 512>}, {pipeline_mode = #tpu.pipeline_mode<synchronous>, transform_indices = @transform_8, window_bounds = array<i64: 1, 512>}, {pipeline_mode = #tpu.pipeline_mode<synchronous>, transform_indices = @transform_9, window_bounds = array<i64: 512, 784>}, {pipeline_mode = #tpu.pipeline_mode<synchronous>, transform_indices = @transform_10, window_bounds = array<i64: 1, 784>}, {transform_indices = @transform_11, window_bounds = array<i64: 16, 784>}]} {
    %c0 = arith.constant 0 : index
    %c0_0 = arith.constant 0 : index
    %0 = vector.load %arg1[%c0, %c0_0] : memref<16x784xf32, #tpu.memory_space<vmem>>, vector<16x784xf32>
    %1 = arith.truncf %0 : vector<16x784xf32> to vector<16x784xbf16>
    %c0_1 = arith.constant 0 : index
    %c0_2 = arith.constant 0 : index
    %2 = vector.load %arg2[%c0_1, %c0_2] : memref<784x512xbf16, #tpu.memory_space<vmem>>, vector<784x512xbf16>
    %cst = arith.constant dense<0.000000e+00> : vector<16x512xf32>
    %3 = tpu.matmul %1, %2, %cst {dimension_numbers = #tpu.dot_dimension_numbers<[1], [0], [0], [1], [0, 0, 1, 1], [], []>} : vector<16x784xbf16>, vector<784x512xbf16>, vector<16x512xf32> -> vector<16x512xf32>
    %c0_3 = arith.constant 0 : index
    %c0_4 = arith.constant 0 : index
    %4 = vector.load %arg3[%c0_3, %c0_4] : memref<1x512xf32, #tpu.memory_space<vmem>>, vector<1x512xf32>
    %5 = vector.broadcast %4 : vector<1x512xf32> to vector<16x512xf32>
    %6 = arith.addf %3, %5 : vector<16x512xf32>
    %cst_5 = arith.constant 0.000000e+00 : f32
    %7 = vector.broadcast %cst_5 : f32 to vector<16x512xf32>
    %8 = arith.maximumf %6, %7 : vector<16x512xf32>
    %9 = arith.truncf %8 : vector<16x512xf32> to vector<16x512xbf16>
    %c0_6 = arith.constant 0 : index
    %c0_7 = arith.constant 0 : index
    %10 = vector.load %arg4[%c0_6, %c0_7] : memref<512x256xbf16, #tpu.memory_space<vmem>>, vector<512x256xbf16>
    %cst_8 = arith.constant dense<0.000000e+00> : vector<16x256xf32>
    %11 = tpu.matmul %9, %10, %cst_8 {dimension_numbers = #tpu.dot_dimension_numbers<[1], [0], [0], [1], [0, 0, 1, 1], [], []>} : vector<16x512xbf16>, vector<512x256xbf16>, vector<16x256xf32> -> vector<16x256xf32>
    %c0_9 = arith.constant 0 : index
    %c0_10 = arith.constant 0 : index
    %12 = vector.load %arg5[%c0_9, %c0_10] : memref<1x256xf32, #tpu.memory_space<vmem>>, vector<1x256xf32>
    %13 = vector.broadcast %12 : vector<1x256xf32> to vector<16x256xf32>
    %14 = arith.addf %11, %13 : vector<16x256xf32>
    %cst_11 = arith.constant 0.000000e+00 : f32
    %15 = vector.broadcast %cst_11 : f32 to vector<16x256xf32>
    %16 = arith.maximumf %14, %15 : vector<16x256xf32>
    %17 = arith.truncf %16 : vector<16x256xf32> to vector<16x256xbf16>
    %c0_12 = arith.constant 0 : index
    %c0_13 = arith.constant 0 : index
    %18 = vector.load %arg6[%c0_12, %c0_13] : memref<256x256xbf16, #tpu.memory_space<vmem>>, vector<256x256xbf16>
    %cst_14 = arith.constant dense<0.000000e+00> : vector<16x256xf32>
    %19 = tpu.matmul %17, %18, %cst_14 {dimension_numbers = #tpu.dot_dimension_numbers<[1], [0], [0], [1], [0, 0, 1, 1], [], []>} : vector<16x256xbf16>, vector<256x256xbf16>, vector<16x256xf32> -> vector<16x256xf32>
    %c0_15 = arith.constant 0 : index
    %c0_16 = arith.constant 0 : index
    %20 = vector.load %arg7[%c0_15, %c0_16] : memref<1x256xf32, #tpu.memory_space<vmem>>, vector<1x256xf32>
    %21 = vector.broadcast %20 : vector<1x256xf32> to vector<16x256xf32>
    %22 = arith.addf %19, %21 : vector<16x256xf32>
    %cst_17 = arith.constant 0.000000e+00 : f32
    %23 = vector.broadcast %cst_17 : f32 to vector<16x256xf32>
    %24 = arith.maximumf %22, %23 : vector<16x256xf32>
    %25 = arith.truncf %24 : vector<16x256xf32> to vector<16x256xbf16>
    %c0_18 = arith.constant 0 : index
    %c0_19 = arith.constant 0 : index
    %26 = vector.load %arg8[%c0_18, %c0_19] : memref<256x512xbf16, #tpu.memory_space<vmem>>, vector<256x512xbf16>
    %cst_20 = arith.constant dense<0.000000e+00> : vector<16x512xf32>
    %27 = tpu.matmul %25, %26, %cst_20 {dimension_numbers = #tpu.dot_dimension_numbers<[1], [0], [0], [1], [0, 0, 1, 1], [], []>} : vector<16x256xbf16>, vector<256x512xbf16>, vector<16x512xf32> -> vector<16x512xf32>
    %c0_21 = arith.constant 0 : index
    %c0_22 = arith.constant 0 : index
    %28 = vector.load %arg9[%c0_21, %c0_22] : memref<1x512xf32, #tpu.memory_space<vmem>>, vector<1x512xf32>
    %29 = vector.broadcast %28 : vector<1x512xf32> to vector<16x512xf32>
    %30 = arith.addf %27, %29 : vector<16x512xf32>
    %cst_23 = arith.constant 0.000000e+00 : f32
    %31 = vector.broadcast %cst_23 : f32 to vector<16x512xf32>
    %32 = arith.maximumf %30, %31 : vector<16x512xf32>
    %33 = arith.truncf %32 : vector<16x512xf32> to vector<16x512xbf16>
    %c0_24 = arith.constant 0 : index
    %c0_25 = arith.constant 0 : index
    %34 = vector.load %arg10[%c0_24, %c0_25] : memref<512x784xbf16, #tpu.memory_space<vmem>>, vector<512x784xbf16>
    %cst_26 = arith.constant dense<0.000000e+00> : vector<16x784xf32>
    %35 = tpu.matmul %33, %34, %cst_26 {dimension_numbers = #tpu.dot_dimension_numbers<[1], [0], [0], [1], [0, 0, 1, 1], [], []>} : vector<16x512xbf16>, vector<512x784xbf16>, vector<16x784xf32> -> vector<16x784xf32>
    %c0_27 = arith.constant 0 : index
    %c0_28 = arith.constant 0 : index
    %36 = vector.load %arg11[%c0_27, %c0_28] : memref<1x784xf32, #tpu.memory_space<vmem>>, vector<1x784xf32>
    %37 = vector.broadcast %36 : vector<1x784xf32> to vector<16x784xf32>
    %38 = arith.addf %35, %37 : vector<16x784xf32>
    %cst_29 = arith.constant 0.000000e+00 : f32
    %39 = vector.broadcast %cst_29 : f32 to vector<16x784xf32>
    %40 = arith.subf %39, %38 : vector<16x784xf32>
    %41 = math.exp %40 : vector<16x784xf32>
    %cst_30 = arith.constant 1.000000e+00 : f32
    %42 = vector.broadcast %cst_30 : f32 to vector<16x784xf32>
    %43 = arith.addf %42, %41 : vector<16x784xf32>
    %44 = tpu.reciprocal %43 {approx = true} : vector<16x784xf32> -> vector<16x784xf32>
    %45 = arith.truncf %44 : vector<16x784xf32> to vector<16x784xbf16>
    %c0_31 = arith.constant 0 : index
    %c0_32 = arith.constant 0 : index
    %46 = vector.load %arg12[%c0_31, %c0_32] : memref<16x784xbf16, #tpu.memory_space<vmem>>, vector<16x784xbf16>
    tpu.vector_store %arg12[%c0_31, %c0_32], %45 {strides = array<i32>} : memref<16x784xbf16, #tpu.memory_space<vmem>>, vector<16x784xbf16>,
    return
  }
  func.func @transform_0(%arg0: i32) -> (i32, i32) {
    %c0_i32 = arith.constant 0 : i32
    %c0_i32_0 = arith.constant 0 : i32
    return %arg0, %c0_i32 : i32, i32
  }
  func.func @transform_1(%arg0: i32) -> (i32, i32) {
    %c0_i32 = arith.constant 0 : i32
    %c0_i32_0 = arith.constant 0 : i32
    %c0_i32_1 = arith.constant 0 : i32
    return %c0_i32, %c0_i32_0 : i32, i32
  }
  func.func @transform_2(%arg0: i32) -> (i32, i32) {
    %c0_i32 = arith.constant 0 : i32
    %c0_i32_0 = arith.constant 0 : i32
    %c0_i32_1 = arith.constant 0 : i32
    return %c0_i32, %c0_i32_0 : i32, i32
  }
  func.func @transform_3(%arg0: i32) -> (i32, i32) {
    %c0_i32 = arith.constant 0 : i32
    %c0_i32_0 = arith.constant 0 : i32
    %c0_i32_1 = arith.constant 0 : i32
    return %c0_i32, %c0_i32_0 : i32, i32
  }
  func.func @transform_4(%arg0: i32) -> (i32, i32) {
    %c0_i32 = arith.constant 0 : i32
    %c0_i32_0 = arith.constant 0 : i32
    %c0_i32_1 = arith.constant 0 : i32
    return %c0_i32, %c0_i32_0 : i32, i32
  }
  func.func @transform_5(%arg0: i32) -> (i32, i32) {
    %c0_i32 = arith.constant 0 : i32
    %c0_i32_0 = arith.constant 0 : i32
    %c0_i32_1 = arith.constant 0 : i32
    return %c0_i32, %c0_i32_0 : i32, i32
  }
  func.func @transform_6(%arg0: i32) -> (i32, i32) {
    %c0_i32 = arith.constant 0 : i32
    %c0_i32_0 = arith.constant 0 : i32
    %c0_i32_1 = arith.constant 0 : i32
    return %c0_i32, %c0_i32_0 : i32, i32
  }
  func.func @transform_7(%arg0: i32) -> (i32, i32) {
    %c0_i32 = arith.constant 0 : i32
    %c0_i32_0 = arith.constant 0 : i32
    %c0_i32_1 = arith.constant 0 : i32
    return %c0_i32, %c0_i32_0 : i32, i32
  }
  func.func @transform_8(%arg0: i32) -> (i32, i32) {
    %c0_i32 = arith.constant 0 : i32
    %c0_i32_0 = arith.constant 0 : i32
    %c0_i32_1 = arith.constant 0 : i32
    return %c0_i32, %c0_i32_0 : i32, i32
  }
  func.func @transform_9(%arg0: i32) -> (i32, i32) {
    %c0_i32 = arith.constant 0 : i32
    %c0_i32_0 = arith.constant 0 : i32
    %c0_i32_1 = arith.constant 0 : i32
    return %c0_i32, %c0_i32_0 : i32, i32
  }
  func.func @transform_10(%arg0: i32) -> (i32, i32) {
    %c0_i32 = arith.constant 0 : i32
    %c0_i32_0 = arith.constant 0 : i32
    %c0_i32_1 = arith.constant 0 : i32
    return %c0_i32, %c0_i32_0 : i32, i32
  }
  func.func @transform_11(%arg0: i32) -> (i32, i32) {
    %c0_i32 = arith.constant 0 : i32
    %c0_i32_0 = arith.constant 0 : i32
    return %arg0, %c0_i32 : i32, i32
  }
}

</mosaic_0001>

<bundles_post_ra>
// kernel: tpu_custom_call.1
= control target key start
LH: loop header
LB: loop body
LE: loop exit
PB: predicated region body
PF: predicated region fallthrough
CT: control target
= control target key end

     0   :  { %s8958_s0 = inlined_call_operand.vmem [shape: f32[32,784], index: 0, kind: input, shape index: {}]   ;;  %s8959_s1 = inlined_call_operand.vmem [shape: bf16[784,512], index: 1, kind: input, shape index: {}]   ;;  %s8960_s2 = inlined_call_operand.vmem [shape: f32[1,512], index: 2, kind: input, shape index: {}]   ;;  %s8961_s3 = inlined_call_operand.vmem [shape: bf16[512,256], index: 3, kind: input, shape index: {}]   ;;  %s8962_s4 = inlined_call_operand.vmem [shape: f32[1,256], index: 4, kind: input, shape index: {}]   ;;  %s8963_s5 = inlined_call_operand.vmem [shape: bf16[256,256], index: 5, kind: input, shape index: {}]   ;;  %s8964_s6 = inlined_call_operand.vmem [shape: f32[1,256], index: 6, kind: input, shape index: {}]   ;;  %s8965_s7 = inlined_call_operand.vmem [shape: bf16[256,512], index: 7, kind: input, shape index: {}]   ;;  %s8966_s8 = inlined_call_operand.vmem [shape: f32[1,512], index: 8, kind: input, shape index: {}]   ;;  %s8967_s9 = inlined_call_operand.vmem [shape: bf16[512,784], index: 9, kind: input, shape index: {}]   ;;  %s8968_s10 = inlined_call_operand.vmem [shape: f32[1,784], index: 10, kind: input, shape index: {}]   ;;  %s8969_s11 = inlined_call_operand.hbm [shape: bf16[32,784], index: 11, kind: output, shape index: {}]  }
   0x1   :  { %8971 = sst [smem:[#allocation7_spill]] %s8958_s0 }
   0x2   :  { %16 = vsyncpa [#allocation3], 0 }
   0x3   :  { %18 = vsyncpa [#allocation3 + $0x1], 0  ;;  %s7001_s17 = smov 0   ;;  %s7003_s18 = smov 0  }
   0x4   :  { %s7005_s19 = smov 0   ;;  %s7007_s20 = smov 0  }
   0x5 LB: > { %8972 = sst [smem:[#allocation5_spill]] %s6931_s19  ;;  %s7022_s21 = sadd.s32 4294967295, %s6935_s20   ;;  %s6935_s20 = sphi %s7007_s20, %s8981_s20   ;;  %s6931_s19 = sphi %s7005_s19, %s8978_s19   ;;  %s6927_s18 = sphi %s7003_s18, %s8980_s18   ;;  %s6923_s17 = sphi %s7001_s17, %s8979_s17  }
   0x6   : > { %s5201_s22 = sadd.s32 4294967294, %s6935_s20   ;;  %s7026_s23 = sadd.s32 1, %s6935_s20  }
   0x7   : > { %s267_s24 = sadd.s32 1, %s6931_s19  ;;  %s264_s25 = ssub.s32 %s6935_s20, %s7026_s23 }
   0x8   : > { %p277_p0 = scmp.ne.s32.totalorder %s6931_s19, %s6927_s18  ;;  %p265_p1 = scmp.eq.s32.totalorder %s264_s25, 0 }
   0x9   : > { %p278_p2 = scmp.eq.s32.totalorder %s7022_s21, 1  ;;  %p283_p3 = scmp.ne.s32.totalorder %s6927_s18, %s6923_s17 }
   0xa   : > { %p284_p4 = scmp.eq.s32.totalorder %s5201_s22, 1  ;;  %p5204_p7 = scmp.ge.s32.totalorder %s6935_s20, 1 }
   0xb   : > { %s7037_s26 = scalar_select %p265_p1, %s6931_s19, %s267_s24  }
   0xc   : > { %p7039_p5 = por %p278_p2, %p277_p0  ;;  %p7043_p6 = por %p284_p4, %p283_p3 }
   0xd   : > { %8973 = sst [smem:[#allocation6_spill]] %s7037_s26  ;;  %p342_p8 = scmp.lt.s32.totalorder %s6935_s20, 3 }
   0xf   : > { %p343_p9 = pnand %p5204_p7, %p342_p8 }
  0x10   : > { %v5963_v0 = vld [vmem:[%s8959_s1 + $0x4] ss:$16 sps:$4 sm:$0xff] (!%p343_p9)   ;;  %v5965_v1 = vld [vmem:[%s8959_s1 + $0xc] ss:$16 sps:$4 sm:$0xff] (!%p343_p9)   ;;  %v5967_v2 = vld [vmem:[%s8959_s1] ss:$16 sps:$4 sm:$0xff] (!%p343_p9)  }
  0x11   : > { %346 = sbr.rel (%p343_p9) target bundleno = 1627 (0x65b), region = 64  ;;  %1615 = vmatprep.subr.bf16.mxu0 (!%p343_p9), %v5963_v0  ;;  %v5968_v3 = vld [vmem:[%s8959_s1 + $0x8] ss:$16 sps:$4 sm:$0xff] (!%p343_p9)   ;;  %1787 = vmatprep.subr.bf16.mxu1 (!%p343_p9), %v5965_v1  ;;  %v5969_v4 = vld [vmem:[%s8959_s1 + $0x24] ss:$16 sps:$4 sm:$0xff] (!%p343_p9)   ;;  %s5205_s24 = sshll.u32 (!%p343_p9), %s7022_s21, 1 }
  0x12   : > { %1616 = vmatpush1.bf16.msra.mxu0 (!%p343_p9), %v5967_v2  ;;  %1788 = vmatpush1.bf16.msra.mxu1 (!%p343_p9), %v5968_v3  ;;  %v5971_v5 = vld [vmem:[%s8959_s1 + $0x2c] ss:$16 sps:$4 sm:$0xff] (!%p343_p9)   ;;  %v5973_v6 = vld [vmem:[%s8959_s1 + $0x20] ss:$16 sps:$4 sm:$0xff] (!%p343_p9)   ;;  %v5974_v7 = vld [vmem:[%s8959_s1 + $0x28] ss:$16 sps:$4 sm:$0xff] (!%p343_p9)  }
  0x13   : > { %1617 = vmatprep.subr.bf16.mxu0 (!%p343_p9), %v5969_v4  ;;  %1789 = vmatprep.subr.bf16.mxu1 (!%p343_p9), %v5971_v5  ;;  %v5975_v8 = vld [vmem:[%s8959_s1 + $0x44] ss:$16 sps:$4 sm:$0xff] (!%p343_p9)   ;;  %v5977_v9 = vld [vmem:[%s8959_s1 + $0x4c] ss:$16 sps:$4 sm:$0xff] (!%p343_p9)   ;;  %v5979_v10 = vld [vmem:[%s8959_s1 + $0x40] ss:$16 sps:$4 sm:$0xff] (!%p343_p9)  }
  0x14   : > { %v5980_v11 = vld [vmem:[%s8959_s1 + $0x48] ss:$16 sps:$4 sm:$0xff] (!%p343_p9)   ;;  %v5981_v12 = vld [vmem:[%s8959_s1 + $0x64] ss:$16 sps:$4 sm:$0xff] (!%p343_p9)   ;;  %v5983_v13 = vld [vmem:[%s8959_s1 + $0x6c] ss:$16 sps:$4 sm:$0xff] (!%p343_p9)  }
  0x15   : > { %v5985_v14 = vld [vmem:[%s8959_s1 + $0x60] ss:$16 sps:$4 sm:$0xff] (!%p343_p9)   ;;  %v5986_v15 = vld [vmem:[%s8959_s1 + $0x68] ss:$16 sps:$4 sm:$0xff] (!%p343_p9)   ;;  %v5987_v16 = vld [vmem:[%s8959_s1 + $0x84] ss:$16 sps:$4 sm:$0xff] (!%p343_p9)  }
  0x16   : > { %1618 = vmatpush1.bf16.msra.mxu0 (!%p343_p9), %v5973_v6  ;;  %1790 = vmatpush1.bf16.msra.mxu1 (!%p343_p9), %v5974_v7  ;;  %v5989_v17 = vld [vmem:[%s8959_s1 + $0x8c] ss:$16 sps:$4 sm:$0xff] (!%p343_p9)   ;;  %v5991_v18 = vld [vmem:[%s8959_s1 + $0x80] ss:$16 sps:$4 sm:$0xff] (!%p343_p9)   ;;  %v5992_v19 = vld [vmem:[%s8959_s1 + $0x88] ss:$16 sps:$4 sm:$0xff] (!%p343_p9)  }
  0x17   : > { %1619 = vmatprep.subr.bf16.mxu0 (!%p343_p9), %v5975_v8  ;;  %1791 = vmatprep.subr.bf16.mxu1 (!%p343_p9), %v5977_v9  ;;  %v5993_v20 = vld [vmem:[%s8959_s1 + $0xa4] ss:$16 sps:$4 sm:$0xff] (!%p343_p9)   ;;  %v5995_v21 = vld [vmem:[%s8959_s1 + $0xac] ss:$16 sps:$4 sm:$0xff] (!%p343_p9)   ;;  %v5997_v22 = vld [vmem:[%s8959_s1 + $0xa0] ss:$16 sps:$4 sm:$0xff] (!%p343_p9)  }
  0x18   : > { %v5998_v23 = vld [vmem:[%s8959_s1 + $0xa8] ss:$16 sps:$4 sm:$0xff]   ;;  %v5999_v24 = vld [vmem:[%s8959_s1 + $0xc4] ss:$16 sps:$4 sm:$0xff]   ;;  %v6001_v25 = vld [vmem:[%s8959_s1 + $0xcc] ss:$16 sps:$4 sm:$0xff]  }
  0x19   : > { %v6003_v26 = vld [vmem:[%s8959_s1 + $0xc0] ss:$16 sps:$4 sm:$0xff]   ;;  %v6004_v27 = vld [vmem:[%s8959_s1 + $0xc8] ss:$16 sps:$4 sm:$0xff]   ;;  %v6005_v28 = vld [vmem:[%s8959_s1 + $0xe4] ss:$16 sps:$4 sm:$0xff]  }
  0x1a   : > { %1620 = vmatpush1.bf16.msra.mxu0 %v5979_v10  ;;  %1792 = vmatpush1.bf16.msra.mxu1 %v5980_v11  ;;  %v6007_v29 = vld [vmem:[%s8959_s1 + $0xec] ss:$16 sps:$4 sm:$0xff]   ;;  %v6009_v30 = vld [vmem:[%s8959_s1 + $0xe0] ss:$16 sps:$4 sm:$0xff]   ;;  %p384_p10 = scmp.lt.s32.totalorder %s5205_s24, 3  ;;  %s8976_s0 = sld [smem:[#allocation7_spill]] }
  0x1b   : > { %1621 = vmatprep.subr.bf16.mxu0 %v5981_v12  ;;  %1793 = vmatprep.subr.bf16.mxu1 %v5983_v13  ;;  %v6010_v31 = vld [vmem:[%s8959_s1 + $0xe8] ss:$16 sps:$4 sm:$0xff]   ;;  %v6011_v32 = vld [vmem:[%s8959_s1 + $0x104] ss:$16 sps:$4 sm:$0xff]   ;;  %v6013_v33 = vld [vmem:[%s8959_s1 + $0x10c] ss:$16 sps:$4 sm:$0xff]  }
  0x1c   : > { %v6015_v34 = vld [vmem:[%s8959_s1 + $0x100] ss:$16 sps:$4 sm:$0xff]   ;;  %v6016_v35 = vld [vmem:[%s8959_s1 + $0x108] ss:$16 sps:$4 sm:$0xff]   ;;  %s8983_s24 = smov (!%p384_p10, %s5205_s24), 3  ;;  %vm1611_vm0 = vcmask 130048  }
  0x1d   : > { %v6017_v36 = vld [vmem:[%s8959_s1 + $0x124] ss:$16 sps:$4 sm:$0xff]   ;;  %v6019_v37 = vld [vmem:[%s8959_s1 + $0x12c] ss:$16 sps:$4 sm:$0xff]   ;;  %v6021_v38 = vld [vmem:[%s8959_s1 + $0x120] ss:$16 sps:$4 sm:$0xff]  }
  0x1e   : > { %1622 = vmatpush1.bf16.msra.mxu0 %v5985_v14  ;;  %1794 = vmatpush1.bf16.msra.mxu1 %v5986_v15  ;;  %s5919_s29 = smul.u32 56, %s8983_s24  ;;  %v6022_v39 = vld [vmem:[%s8959_s1 + $0x128] ss:$16 sps:$4 sm:$0xff]   ;;  %v6023_v40 = vld [vmem:[%s8959_s1 + $0x144] ss:$16 sps:$4 sm:$0xff]   ;;  %s380_s30 = sand.u32 1, %s6927_s18  }
  0x1f   : > { %1623 = vmatprep.subr.bf16.mxu0 %v5987_v16  ;;  %1795 = vmatprep.subr.bf16.mxu1 %v5989_v17  ;;  %v6025_v41 = vld [vmem:[%s8959_s1 + $0x14c] ss:$16 sps:$4 sm:$0xff]   ;;  %v6027_v42 = vld [vmem:[%s8959_s1 + $0x140] ss:$16 sps:$4 sm:$0xff]   ;;  %v6028_v43 = vld [vmem:[%s8959_s1 + $0x148] ss:$16 sps:$4 sm:$0xff]  }
  0x20   : > { %s7185_s19 = scalar_lea.vmem %s8976_s0, %s5919_s29  ;;  %v6029_v44 = vld [vmem:[%s8959_s1 + $0x164] ss:$16 sps:$4 sm:$0xff]   ;;  %v6031_v45 = vld [vmem:[%s8959_s1 + $0x16c] ss:$16 sps:$4 sm:$0xff]   ;;  %v6033_v48 = vld [vmem:[%s8959_s1 + $0x160] ss:$16 sps:$4 sm:$0xff]  }
  0x21   : > { %v393_v46 = vld [vmem:[%s7185_s19 + $0x8] sm:$0xff]  ;;  %v400_v47 = vld [vmem:[%s7185_s19 + $0x40] sm:$0xff]  ;;  %v399_v5 = vld [vmem:[%s7185_s19 + $0x38] sm:$0xff]  ;;  %s5918_s12 = smul.u32 56, %s380_s30  ;;  %vm5118_vm1 = vcmask 125952   ;;  %s6938_s24 = smov [#allocation2]  }
  0x22   : > { %1624 = vmatpush1.bf16.msra.mxu0 %v5991_v18  ;;  %1796 = vmatpush1.bf16.msra.mxu1 %v5992_v19  ;;  %v6034_v49 = vld [vmem:[%s8959_s1 + $0x168] ss:$16 sps:$4 sm:$0xff]   ;;  %v407_v50 = vpack.c.bf16 %v400_v47, %v393_v46  ;;  %v6035_v51 = vld [vmem:[%s8959_s1 + $0x184] ss:$16 sps:$4 sm:$0xff]   ;;  %v6037_v52 = vld [vmem:[%s8959_s1 + $0x18c] ss:$16 sps:$4 sm:$0xff]  }
  0x23   : > { %1625 = vmatprep.subr.bf16.mxu0 %v5993_v20  ;;  %1797 = vmatprep.subr.bf16.mxu1 %v5995_v21  ;;  %v6039_v53 = vld [vmem:[%s8959_s1 + $0x180] ss:$16 sps:$4 sm:$0xff]   ;;  %v6040_v54 = vld [vmem:[%s8959_s1 + $0x188] ss:$16 sps:$4 sm:$0xff]   ;;  %v6041_v55 = vld [vmem:[%s8959_s1 + $0x1a4] ss:$16 sps:$4 sm:$0xff]  }
  0x24   : > { %1647 = vmatprep.mubr.bf16.mxu0 %v407_v50  ;;  %1819 = vmatprep.mubr.bf16.mxu1 %v407_v50  ;;  %v6043_v56 = vld [vmem:[%s8959_s1 + $0x1ac] ss:$16 sps:$4 sm:$0xff]   ;;  %v6045_v57 = vld [vmem:[%s8959_s1 + $0x1a0] ss:$16 sps:$4 sm:$0xff]   ;;  %v6046_v58 = vld [vmem:[%s8959_s1 + $0x1a8] ss:$16 sps:$4 sm:$0xff]  }
  0x25   : > { %v6047_v59 = vld [vmem:[%s8959_s1 + $0x1c4] ss:$16 sps:$4 sm:$0xff]   ;;  %v6049_v60 = vld [vmem:[%s8959_s1 + $0x1cc] ss:$16 sps:$4 sm:$0xff]   ;;  %v6051_v61 = vld [vmem:[%s8959_s1 + $0x1c0] ss:$16 sps:$4 sm:$0xff]  }
  0x26   : > { %1626 = vmatpush1.bf16.msra.mxu0 %v5997_v22  ;;  %1798 = vmatpush1.bf16.msra.mxu1 %v5998_v23  ;;  %v6052_v62 = vld [vmem:[%s8959_s1 + $0x1c8] ss:$16 sps:$4 sm:$0xff]   ;;  %v6053_v63 = vld [vmem:[%s8959_s1 + $0x1e4] ss:$16 sps:$4 sm:$0xff]   ;;  %v6055_v0 = vld [vmem:[%s8959_s1 + $0x1ec] ss:$16 sps:$4 sm:$0xff]  }
  0x27   : > { %1627 = vmatprep.subr.bf16.mxu0 %v5999_v24  ;;  %1799 = vmatprep.subr.bf16.mxu1 %v6001_v25  ;;  %v6057_v1 = vld [vmem:[%s8959_s1 + $0x1e0] ss:$16 sps:$4 sm:$0xff]   ;;  %v6058_v2 = vld [vmem:[%s8959_s1 + $0x1e8] ss:$16 sps:$4 sm:$0xff]   ;;  %v6061_v3 = vld [vmem:[%s8959_s1 + $0x204] ss:$16 sps:$4 sm:$0xff]  }
  0x28   : > { %v392_v4 = vld [vmem:[%s7185_s19] sm:$0xff]  ;;  %v6064_v6 = vld [vmem:[%s8959_s1 + $0x20c] ss:$16 sps:$4 sm:$0xff]   ;;  %v6062_v8 = vld [vmem:[%s8959_s1 + $0x208] ss:$16 sps:$4 sm:$0xff]   ;;  %s8890_s0 = scalar_lea.vmem [#allocation2], %s5918_s12 }
  0x29   : > { %v6059_v7 = vld [vmem:[%s8959_s1 + $0x200] ss:$16 sps:$4 sm:$0xff]   ;;  %v406_v9 = vpack.c.bf16 %v399_v5, %v392_v4  ;;  %v6067_v10 = vld [vmem:[%s8959_s1 + $0x224] ss:$16 sps:$4 sm:$0xff]   ;;  %v6070_v11 = vld [vmem:[%s8959_s1 + $0x22c] ss:$16 sps:$4 sm:$0xff]  }
  0x2a   : > { %1628 = vmatpush1.bf16.msra.mxu0 %v6003_v26  ;;  %1800 = vmatpush1.bf16.msra.mxu1 %v6004_v27  ;;  %v6065_v12 = vld [vmem:[%s8959_s1 + $0x220] ss:$16 sps:$4 sm:$0xff]   ;;  %v6068_v13 = vld [vmem:[%s8959_s1 + $0x228] ss:$16 sps:$4 sm:$0xff]   ;;  %v6073_v14 = vld [vmem:[%s8959_s1 + $0x244] ss:$16 sps:$4 sm:$0xff]  }
  0x2b   : > { %1629 = vmatprep.subr.bf16.mxu0 %v6005_v28  ;;  %1801 = vmatprep.subr.bf16.mxu1 %v6007_v29  ;;  %v6076_v15 = vld [vmem:[%s8959_s1 + $0x24c] ss:$16 sps:$4 sm:$0xff]   ;;  %v6071_v16 = vld [vmem:[%s8959_s1 + $0x240] ss:$16 sps:$4 sm:$0xff]   ;;  %v6074_v17 = vld [vmem:[%s8959_s1 + $0x248] ss:$16 sps:$4 sm:$0xff]  }
  0x2c   : > { %v6079_v18 = vld [vmem:[%s8959_s1 + $0x264] ss:$16 sps:$4 sm:$0xff]   ;;  %v6082_v19 = vld [vmem:[%s8959_s1 + $0x26c] ss:$16 sps:$4 sm:$0xff]   ;;  %v6077_v20 = vld [vmem:[%s8959_s1 + $0x260] ss:$16 sps:$4 sm:$0xff]  }
  0x2d   : > { %v6080_v21 = vld [vmem:[%s8959_s1 + $0x268] ss:$16 sps:$4 sm:$0xff]   ;;  %v6085_v22 = vld [vmem:[%s8959_s1 + $0x284] ss:$16 sps:$4 sm:$0xff]   ;;  %v6088_v23 = vld [vmem:[%s8959_s1 + $0x28c] ss:$16 sps:$4 sm:$0xff]  }
  0x2e   : > { %1630 = vmatpush1.bf16.msra.mxu0 %v6009_v30  ;;  %1802 = vmatpush1.bf16.msra.mxu1 %v6010_v31  ;;  %v6083_v24 = vld [vmem:[%s8959_s1 + $0x280] ss:$16 sps:$4 sm:$0xff]   ;;  %v6086_v25 = vld [vmem:[%s8959_s1 + $0x288] ss:$16 sps:$4 sm:$0xff]   ;;  %v6091_v26 = vld [vmem:[%s8959_s1 + $0x2a4] ss:$16 sps:$4 sm:$0xff]  }
  0x2f   : > { %1631 = vmatprep.subr.bf16.mxu0 %v6011_v32  ;;  %1803 = vmatprep.subr.bf16.mxu1 %v6013_v33  ;;  %v6094_v27 = vld [vmem:[%s8959_s1 + $0x2ac] ss:$16 sps:$4 sm:$0xff]   ;;  %v6089_v28 = vld [vmem:[%s8959_s1 + $0x2a0] ss:$16 sps:$4 sm:$0xff]   ;;  %v6092_v29 = vld [vmem:[%s8959_s1 + $0x2a8] ss:$16 sps:$4 sm:$0xff]  }
  0x30   : > { %v6097_v30 = vld [vmem:[%s8959_s1 + $0x2c4] ss:$16 sps:$4 sm:$0xff]   ;;  %v6100_v31 = vld [vmem:[%s8959_s1 + $0x2cc] ss:$16 sps:$4 sm:$0xff]   ;;  %v6113_v47 = vld [vmem:[%s8959_s1 + $0x320] ss:$16 sps:$4 sm:$0xff]  }
  0x31   : > { %v395_v32 = vld [vmem:[%s7185_s19 + $0x18] sm:$0xff]  ;;  %v402_v33 = vld [vmem:[%s7185_s19 + $0x50] sm:$0xff]  ;;  %s5920_s13 = smul.u32 896, %s7022_s21  ;;  %s5139_s14 = sshll.u32 %s8890_s0, 4  ;;  %s8906_s14 = int_to_ptr.vmem [resolvable:$true] %s5139_s14 }
  0x32   : > { %1632 = vmatpush1.bf16.msra.mxu0 %v6015_v34  ;;  %1804 = vmatpush1.bf16.msra.mxu1 %v6016_v35  ;;  %v6095_v34 = vld [vmem:[%s8959_s1 + $0x2c0] ss:$16 sps:$4 sm:$0xff]   ;;  %v6098_v35 = vld [vmem:[%s8959_s1 + $0x2c8] ss:$16 sps:$4 sm:$0xff]   ;;  %v6118_v46 = vld [vmem:[%s8959_s1 + $0x32c] ss:$16 sps:$4 sm:$0xff]  }
  0x33   : > { %1633 = vmatprep.subr.bf16.mxu0 %v6017_v36  ;;  %1805 = vmatprep.subr.bf16.mxu1 %v6019_v37  ;;  %v409_v36 = vpack.c.bf16 %v402_v33, %v395_v32  ;;  %v6103_v37 = vld [vmem:[%s8959_s1 + $0x2e4] ss:$16 sps:$4 sm:$0xff]   ;;  %v6124_v50 = vld [vmem:[%s8959_s1 + $0x34c] ss:$16 sps:$4 sm:$0xff]   ;;  %v6146_v4 = vld [vmem:[%s8959_s1 + $0x3c8] ss:$16 sps:$4 sm:$0xff]   ;;  %s8912_s16 = scalar_lea.hbm %s8969_s11, %s5920_s13 }
  0x34   : > { %v6151_v5 = vld [vmem:[%s8959_s1 + $0x3e4] ss:$16 sps:$4 sm:$0xff]   ;;  %v6184_v32 = vld [vmem:[%s8959_s1 + $0x48c] ss:$16 sps:$4 sm:$0xff]   ;;  %v6179_v33 = vld [vmem:[%s8959_s1 + $0x480] ss:$16 sps:$4 sm:$0xff]  }
  0x35   : > { %s8917_s21 = scalar_lea.sflag [#allocation3], %s380_s30  ;;  %s6873_s22 = scalar_lea.vmem %s8906_s14, 896 }
  0x36   : > { %1634 = vmatpush1.bf16.msra.mxu0 %v6021_v38  ;;  %1806 = vmatpush1.bf16.msra.mxu1 %v6022_v39  ;;  %v6106_v38 = vld [vmem:[%s8959_s1 + $0x2ec] ss:$16 sps:$4 sm:$0xff]   ;;  %v6101_v39 = vld [vmem:[%s8959_s1 + $0x2e0] ss:$16 sps:$4 sm:$0xff]   ;;  %p6874_p11 = scmp.ne.s32.totalorder %s8906_s14, %s6873_s22  ;;  %s6877_s25 = sshll.u32 %s6938_s24, 4  ;;  %s6878_s25 = int_to_ptr.vmem [resolvable:$false] %s6877_s25 }
  0x37   : > { %1635 = vmatprep.subr.bf16.mxu0 %v6023_v40  ;;  %1807 = vmatprep.subr.bf16.mxu1 %v6025_v41  ;;  %v6104_v40 = vld [vmem:[%s8959_s1 + $0x2e8] ss:$16 sps:$4 sm:$0xff]   ;;  %v6109_v41 = vld [vmem:[%s8959_s1 + $0x304] ss:$16 sps:$4 sm:$0xff]   ;;  %s6879_s26 = scalar_lea.vmem %s6878_s25, 1792  ;;  %p6880_p0 = scmp.lt.s32.totalorder %s8906_s14, %s6878_s25 }
  0x38   : > { %p6875_p12 = pnand %p6874_p11, %p7039_p5  ;;  %p6881_p1 = scmp.lt.s32.totalorder %s6879_s26, %s6873_s22 }
  0x3a   : > { %1636 = vmatpush1.bf16.msra.mxu0 %v6027_v42  ;;  %1808 = vmatpush1.bf16.msra.mxu1 %v6028_v43  ;;  %v6112_v42 = vld [vmem:[%s8959_s1 + $0x30c] ss:$16 sps:$4 sm:$0xff]   ;;  %v6107_v43 = vld [vmem:[%s8959_s1 + $0x300] ss:$16 sps:$4 sm:$0xff]   ;;  %p6876_p13 = pneg %p6875_p12  ;;  %p6882_p2 = por %p6881_p1, %p6880_p0 }
  0x3b   : > { %1637 = vmatprep.subr.bf16.mxu0 %v6029_v44  ;;  %1809 = vmatprep.subr.bf16.mxu1 %v6031_v45  ;;  %v6110_v44 = vld [vmem:[%s8959_s1 + $0x308] ss:$16 sps:$4 sm:$0xff]   ;;  %v6115_v45 = vld [vmem:[%s8959_s1 + $0x324] ss:$16 sps:$4 sm:$0xff]  }
  0x3c   : > { %p6883_p3 = pnand %p6882_p2, %p6876_p13 }
  0x3e   : > { %1638 = vmatpush1.bf16.msra.mxu0 %v6033_v48  ;;  %1810 = vmatpush1.bf16.msra.mxu1 %v6034_v49  ;;  %v6116_v48 = vld [vmem:[%s8959_s1 + $0x328] ss:$16 sps:$4 sm:$0xff]   ;;  %v6121_v49 = vld [vmem:[%s8959_s1 + $0x344] ss:$16 sps:$4 sm:$0xff]  }
  0x3f   : > { %1639 = vmatprep.subr.bf16.mxu0 %v6035_v51  ;;  %1811 = vmatprep.subr.bf16.mxu1 %v6037_v52  ;;  %v6119_v51 = vld [vmem:[%s8959_s1 + $0x340] ss:$16 sps:$4 sm:$0xff]   ;;  %v6122_v52 = vld [vmem:[%s8959_s1 + $0x348] ss:$16 sps:$4 sm:$0xff]  }
  0x42   : > { %1640 = vmatpush1.bf16.msra.mxu0 %v6039_v53  ;;  %1812 = vmatpush1.bf16.msra.mxu1 %v6040_v54  ;;  %v6127_v53 = vld [vmem:[%s8959_s1 + $0x364] ss:$16 sps:$4 sm:$0xff]   ;;  %v6130_v54 = vld [vmem:[%s8959_s1 + $0x36c] ss:$16 sps:$4 sm:$0xff]  }
  0x43   : > { %1641 = vmatprep.subr.bf16.mxu0 %v6041_v55  ;;  %1813 = vmatprep.subr.bf16.mxu1 %v6043_v56  ;;  %v6125_v55 = vld [vmem:[%s8959_s1 + $0x360] ss:$16 sps:$4 sm:$0xff]   ;;  %v6128_v56 = vld [vmem:[%s8959_s1 + $0x368] ss:$16 sps:$4 sm:$0xff]  }
  0x46   : > { %1642 = vmatpush1.bf16.msra.mxu0 %v6045_v57  ;;  %1814 = vmatpush1.bf16.msra.mxu1 %v6046_v58  ;;  %v6133_v57 = vld [vmem:[%s8959_s1 + $0x384] ss:$16 sps:$4 sm:$0xff]   ;;  %v6136_v58 = vld [vmem:[%s8959_s1 + $0x38c] ss:$16 sps:$4 sm:$0xff]  }
  0x47   : > { %1643 = vmatprep.subr.bf16.mxu0 %v6047_v59  ;;  %1815 = vmatprep.subr.bf16.mxu1 %v6049_v60  ;;  %v6131_v59 = vld [vmem:[%s8959_s1 + $0x380] ss:$16 sps:$4 sm:$0xff]   ;;  %v6134_v60 = vld [vmem:[%s8959_s1 + $0x388] ss:$16 sps:$4 sm:$0xff]  }
  0x4a   : > { %1644 = vmatpush1.bf16.msra.mxu0 %v6051_v61  ;;  %1816 = vmatpush1.bf16.msra.mxu1 %v6052_v62  ;;  %v6139_v61 = vld [vmem:[%s8959_s1 + $0x3a4] ss:$16 sps:$4 sm:$0xff]   ;;  %v6142_v62 = vld [vmem:[%s8959_s1 + $0x3ac] ss:$16 sps:$4 sm:$0xff]  }
  0x4b   : > { %1645 = vmatprep.subr.bf16.mxu0 %v6053_v63  ;;  %1817 = vmatprep.subr.bf16.mxu1 %v6055_v0  ;;  %v6137_v63 = vld [vmem:[%s8959_s1 + $0x3a0] ss:$16 sps:$4 sm:$0xff]   ;;  %v6140_v0 = vld [vmem:[%s8959_s1 + $0x3a8] ss:$16 sps:$4 sm:$0xff]  }
  0x4e   : > { %1646 = vmatpush1.bf16.msra.mxu0 %v6057_v1  ;;  %1818 = vmatpush1.bf16.msra.mxu1 %v6058_v2  ;;  %v6145_v1 = vld [vmem:[%s8959_s1 + $0x3c4] ss:$16 sps:$4 sm:$0xff]   ;;  %v6148_v2 = vld [vmem:[%s8959_s1 + $0x3cc] ss:$16 sps:$4 sm:$0xff]  }
  0x4f   : > { %1658 = vmatprep.subr.bf16.mxu0 %v6061_v3  ;;  %1830 = vmatprep.subr.bf16.mxu1 %v6064_v6  ;;  %v6143_v3 = vld [vmem:[%s8959_s1 + $0x3c0] ss:$16 sps:$4 sm:$0xff]   ;;  %v6154_v6 = vld [vmem:[%s8959_s1 + $0x3ec] ss:$16 sps:$4 sm:$0xff]  }
  0x51   : > { %1648 = vmatmul.mubr.bf16.vlgmr.msra.gmra.mrb[0].mxu0 %v406_v9  ;;  %1820 = vmatmul.mubr.bf16.vlgmr.msra.gmra.mrb[0].mxu1 %v406_v9  ;;  %v6157_v9 = vld [vmem:[%s8959_s1 + $0x404] ss:$16 sps:$4 sm:$0xff]  }
  0x52   : > { %1659 = vmatpush1.bf16.msra.mxu0 %v6059_v7  ;;  %1831 = vmatpush1.bf16.msra.mxu1 %v6062_v8  ;;  %v6149_v7 = vld [vmem:[%s8959_s1 + $0x3e0] ss:$16 sps:$4 sm:$0xff]   ;;  %v6152_v8 = vld [vmem:[%s8959_s1 + $0x3e8] ss:$16 sps:$4 sm:$0xff]  }
  0x53   : > { %1660 = vmatprep.subr.bf16.mxu0 %v6067_v10  ;;  %1832 = vmatprep.subr.bf16.mxu1 %v6070_v11  ;;  %v394_v10 = vld [vmem:[%s7185_s19 + $0x10] sm:$0xff]  ;;  %v401_v11 = vld [vmem:[%s7185_s19 + $0x48] sm:$0xff] }
  0x54   : > { %1690 = vmatprep.mubr.bf16.mxu0 %v409_v36  ;;  %1862 = vmatprep.mubr.bf16.mxu1 %v409_v36  ;;  %v6190_v36 = vld [vmem:[%s8959_s1 + $0x4ac] ss:$16 sps:$4 sm:$0xff]  }
  0x56   : > { %1661 = vmatpush1.bf16.msra.mxu0 %v6065_v12  ;;  %1833 = vmatpush1.bf16.msra.mxu1 %v6068_v13  ;;  %v6160_v12 = vld [vmem:[%s8959_s1 + $0x40c] ss:$16 sps:$4 sm:$0xff]   ;;  %v6155_v13 = vld [vmem:[%s8959_s1 + $0x400] ss:$16 sps:$4 sm:$0xff]  }
  0x57   : > { %1662 = vmatprep.subr.bf16.mxu0 %v6073_v14  ;;  %1834 = vmatprep.subr.bf16.mxu1 %v6076_v15  ;;  %v6158_v14 = vld [vmem:[%s8959_s1 + $0x408] ss:$16 sps:$4 sm:$0xff]   ;;  %v408_v15 = vpack.c.bf16 %v401_v11, %v394_v10  ;;  %v6247_v11 = vld [vmem:[%s8959_s1 + $0x5e4] ss:$16 sps:$4 sm:$0xff]  }
  0x58   : > { %v6242_v10 = vld [vmem:[%s8959_s1 + $0x5c8] ss:$16 sps:$4 sm:$0xff]  }
  0x5a   : > { %1663 = vmatpush1.bf16.msra.mxu0 %v6071_v16  ;;  %1835 = vmatpush1.bf16.msra.mxu1 %v6074_v17  ;;  %v6163_v16 = vld [vmem:[%s8959_s1 + $0x424] ss:$16 sps:$4 sm:$0xff]   ;;  %v6166_v17 = vld [vmem:[%s8959_s1 + $0x42c] ss:$16 sps:$4 sm:$0xff]  }
  0x5b   : > { %1664 = vmatprep.subr.bf16.mxu0 %v6079_v18  ;;  %1836 = vmatprep.subr.bf16.mxu1 %v6082_v19  ;;  %v397_v18 = vld [vmem:[%s7185_s19 + $0x28] sm:$0xff]  ;;  %v6161_v19 = vld [vmem:[%s8959_s1 + $0x420] ss:$16 sps:$4 sm:$0xff]  }
  0x5e   : > { %1665 = vmatpush1.bf16.msra.mxu0 %v6077_v20  ;;  %1837 = vmatpush1.bf16.msra.mxu1 %v6080_v21  ;;  %v6164_v20 = vld [vmem:[%s8959_s1 + $0x428] ss:$16 sps:$4 sm:$0xff]   ;;  %v404_v21 = vld [vmem:[%s7185_s19 + $0x60] sm:$0xff] }
  0x5f   : > { %1666 = vmatprep.subr.bf16.mxu0 %v6085_v22  ;;  %1838 = vmatprep.subr.bf16.mxu1 %v6088_v23  ;;  %v6169_v22 = vld [vmem:[%s8959_s1 + $0x444] ss:$16 sps:$4 sm:$0xff]   ;;  %v411_v23 = vpack.c.bf16 %v404_v21, %v397_v18  ;;  %v6256_v18 = vld [vmem:[%s8959_s1 + $0x60c] ss:$16 sps:$4 sm:$0xff]  }
  0x62   : > { %1667 = vmatpush1.bf16.msra.mxu0 %v6083_v24  ;;  %1839 = vmatpush1.bf16.msra.mxu1 %v6086_v25  ;;  %v6172_v24 = vld [vmem:[%s8959_s1 + $0x44c] ss:$16 sps:$4 sm:$0xff]   ;;  %v6167_v25 = vld [vmem:[%s8959_s1 + $0x440] ss:$16 sps:$4 sm:$0xff]  }
  0x63   : > { %1668 = vmatprep.subr.bf16.mxu0 %v6091_v26  ;;  %1840 = vmatprep.subr.bf16.mxu1 %v6094_v27  ;;  %v6170_v26 = vld [vmem:[%s8959_s1 + $0x448] ss:$16 sps:$4 sm:$0xff]   ;;  %v6175_v27 = vld [vmem:[%s8959_s1 + $0x464] ss:$16 sps:$4 sm:$0xff]  }
  0x66   : > { %1669 = vmatpush1.bf16.msra.mxu0 %v6089_v28  ;;  %1841 = vmatpush1.bf16.msra.mxu1 %v6092_v29  ;;  %v6178_v28 = vld [vmem:[%s8959_s1 + $0x46c] ss:$16 sps:$4 sm:$0xff]   ;;  %v6173_v29 = vld [vmem:[%s8959_s1 + $0x460] ss:$16 sps:$4 sm:$0xff]  }
  0x67   : > { %1670 = vmatprep.subr.bf16.mxu0 %v6097_v30  ;;  %1842 = vmatprep.subr.bf16.mxu1 %v6100_v31  ;;  %v6176_v30 = vld [vmem:[%s8959_s1 + $0x468] ss:$16 sps:$4 sm:$0xff]   ;;  %v6181_v31 = vld [vmem:[%s8959_s1 + $0x484] ss:$16 sps:$4 sm:$0xff]  }
  0x6a   : > { %1671 = vmatpush1.bf16.msra.mxu0 %v6095_v34  ;;  %1843 = vmatpush1.bf16.msra.mxu1 %v6098_v35  ;;  %v6182_v34 = vld [vmem:[%s8959_s1 + $0x488] ss:$16 sps:$4 sm:$0xff]   ;;  %v6187_v35 = vld [vmem:[%s8959_s1 + $0x4a4] ss:$16 sps:$4 sm:$0xff]  }
  0x6b   : > { %1672 = vmatprep.subr.bf16.mxu0 %v6103_v37  ;;  %1844 = vmatprep.subr.bf16.mxu1 %v6106_v38  ;;  %v6185_v37 = vld [vmem:[%s8959_s1 + $0x4a0] ss:$16 sps:$4 sm:$0xff]   ;;  %v6188_v38 = vld [vmem:[%s8959_s1 + $0x4a8] ss:$16 sps:$4 sm:$0xff]  }
  0x6e   : > { %1673 = vmatpush1.bf16.msra.mxu0 %v6101_v39  ;;  %1845 = vmatpush1.bf16.msra.mxu1 %v6104_v40  ;;  %v6193_v39 = vld [vmem:[%s8959_s1 + $0x4c4] ss:$16 sps:$4 sm:$0xff]   ;;  %v6196_v40 = vld [vmem:[%s8959_s1 + $0x4cc] ss:$16 sps:$4 sm:$0xff]  }
  0x6f   : > { %1674 = vmatprep.subr.bf16.mxu0 %v6109_v41  ;;  %1846 = vmatprep.subr.bf16.mxu1 %v6112_v42  ;;  %v6191_v41 = vld [vmem:[%s8959_s1 + $0x4c0] ss:$16 sps:$4 sm:$0xff]   ;;  %v6194_v42 = vld [vmem:[%s8959_s1 + $0x4c8] ss:$16 sps:$4 sm:$0xff]  }
  0x72   : > { %1675 = vmatpush1.bf16.msra.mxu0 %v6107_v43  ;;  %1847 = vmatpush1.bf16.msra.mxu1 %v6110_v44  ;;  %v6199_v43 = vld [vmem:[%s8959_s1 + $0x4e4] ss:$16 sps:$4 sm:$0xff]   ;;  %v6202_v44 = vld [vmem:[%s8959_s1 + $0x4ec] ss:$16 sps:$4 sm:$0xff]  }
  0x73   : > { %1676 = vmatprep.subr.bf16.mxu0 %v6115_v45  ;;  %1848 = vmatprep.subr.bf16.mxu1 %v6118_v46  ;;  %v6197_v45 = vld [vmem:[%s8959_s1 + $0x4e0] ss:$16 sps:$4 sm:$0xff]   ;;  %v6200_v46 = vld [vmem:[%s8959_s1 + $0x4e8] ss:$16 sps:$4 sm:$0xff]  }
  0x76   : > { %1677 = vmatpush1.bf16.msra.mxu0 %v6113_v47  ;;  %1849 = vmatpush1.bf16.msra.mxu1 %v6116_v48  ;;  %v6205_v47 = vld [vmem:[%s8959_s1 + $0x504] ss:$16 sps:$4 sm:$0xff]   ;;  %v6208_v48 = vld [vmem:[%s8959_s1 + $0x50c] ss:$16 sps:$4 sm:$0xff]  }
  0x77   : > { %1678 = vmatprep.subr.bf16.mxu0 %v6121_v49  ;;  %1850 = vmatprep.subr.bf16.mxu1 %v6124_v50  ;;  %v6203_v49 = vld [vmem:[%s8959_s1 + $0x500] ss:$16 sps:$4 sm:$0xff]   ;;  %v6206_v50 = vld [vmem:[%s8959_s1 + $0x508] ss:$16 sps:$4 sm:$0xff]  }
  0x7a   : > { %1679 = vmatpush1.bf16.msra.mxu0 %v6119_v51  ;;  %1851 = vmatpush1.bf16.msra.mxu1 %v6122_v52  ;;  %v6211_v51 = vld [vmem:[%s8959_s1 + $0x524] ss:$16 sps:$4 sm:$0xff]   ;;  %v6214_v52 = vld [vmem:[%s8959_s1 + $0x52c] ss:$16 sps:$4 sm:$0xff]  }
  0x7b   : > { %1680 = vmatprep.subr.bf16.mxu0 %v6127_v53  ;;  %1852 = vmatprep.subr.bf16.mxu1 %v6130_v54  ;;  %v6209_v53 = vld [vmem:[%s8959_s1 + $0x520] ss:$16 sps:$4 sm:$0xff]   ;;  %v6212_v54 = vld [vmem:[%s8959_s1 + $0x528] ss:$16 sps:$4 sm:$0xff]  }
  0x7e   : > { %1681 = vmatpush1.bf16.msra.mxu0 %v6125_v55  ;;  %1853 = vmatpush1.bf16.msra.mxu1 %v6128_v56  ;;  %v6217_v55 = vld [vmem:[%s8959_s1 + $0x544] ss:$16 sps:$4 sm:$0xff]   ;;  %v6220_v56 = vld [vmem:[%s8959_s1 + $0x54c] ss:$16 sps:$4 sm:$0xff]  }
  0x7f   : > { %1682 = vmatprep.subr.bf16.mxu0 %v6133_v57  ;;  %1854 = vmatprep.subr.bf16.mxu1 %v6136_v58  ;;  %v6215_v57 = vld [vmem:[%s8959_s1 + $0x540] ss:$16 sps:$4 sm:$0xff]   ;;  %v6218_v58 = vld [vmem:[%s8959_s1 + $0x548] ss:$16 sps:$4 sm:$0xff]  }
  0x82   : > { %1683 = vmatpush1.bf16.msra.mxu0 %v6131_v59  ;;  %1855 = vmatpush1.bf16.msra.mxu1 %v6134_v60  ;;  %v6223_v59 = vld [vmem:[%s8959_s1 + $0x564] ss:$16 sps:$4 sm:$0xff]   ;;  %v6226_v60 = vld [vmem:[%s8959_s1 + $0x56c] ss:$16 sps:$4 sm:$0xff]  }
  0x83   : > { %1684 = vmatprep.subr.bf16.mxu0 %v6139_v61  ;;  %1856 = vmatprep.subr.bf16.mxu1 %v6142_v62  ;;  %v6221_v61 = vld [vmem:[%s8959_s1 + $0x560] ss:$16 sps:$4 sm:$0xff]   ;;  %v6224_v62 = vld [vmem:[%s8959_s1 + $0x568] ss:$16 sps:$4 sm:$0xff]  }
  0x86   : > { %1685 = vmatpush1.bf16.msra.mxu0 %v6137_v63  ;;  %1857 = vmatpush1.bf16.msra.mxu1 %v6140_v0  ;;  %v6229_v63 = vld [vmem:[%s8959_s1 + $0x584] ss:$16 sps:$4 sm:$0xff]   ;;  %v6232_v0 = vld [vmem:[%s8959_s1 + $0x58c] ss:$16 sps:$4 sm:$0xff]  }
  0x87   : > { %1686 = vmatprep.subr.bf16.mxu0 %v6145_v1  ;;  %1858 = vmatprep.subr.bf16.mxu1 %v6148_v2  ;;  %v6227_v1 = vld [vmem:[%s8959_s1 + $0x580] ss:$16 sps:$4 sm:$0xff]   ;;  %v6230_v2 = vld [vmem:[%s8959_s1 + $0x588] ss:$16 sps:$4 sm:$0xff]  }
  0x8a   : > { %1687 = vmatpush1.bf16.msra.mxu0 %v6143_v3  ;;  %1859 = vmatpush1.bf16.msra.mxu1 %v6146_v4  ;;  %v6235_v3 = vld [vmem:[%s8959_s1 + $0x5a4] ss:$16 sps:$4 sm:$0xff]   ;;  %v6238_v4 = vld [vmem:[%s8959_s1 + $0x5ac] ss:$16 sps:$4 sm:$0xff]  }
  0x8b   : > { %1688 = vmatprep.subr.bf16.mxu0 %v6151_v5  ;;  %1860 = vmatprep.subr.bf16.mxu1 %v6154_v6  ;;  %v6233_v5 = vld [vmem:[%s8959_s1 + $0x5a0] ss:$16 sps:$4 sm:$0xff]   ;;  %v6236_v6 = vld [vmem:[%s8959_s1 + $0x5a8] ss:$16 sps:$4 sm:$0xff]  }
  0x8e   : > { %1689 = vmatpush1.bf16.msra.mxu0 %v6149_v7  ;;  %1861 = vmatpush1.bf16.msra.mxu1 %v6152_v8  ;;  %v6241_v7 = vld [vmem:[%s8959_s1 + $0x5c4] ss:$16 sps:$4 sm:$0xff]   ;;  %v6244_v8 = vld [vmem:[%s8959_s1 + $0x5cc] ss:$16 sps:$4 sm:$0xff]  }
  0x8f   : > { %1701 = vmatprep.subr.bf16.mxu0 %v6157_v9  ;;  %1873 = vmatprep.subr.bf16.mxu1 %v6160_v12  ;;  %v6239_v9 = vld [vmem:[%s8959_s1 + $0x5c0] ss:$16 sps:$4 sm:$0xff]   ;;  %v6250_v12 = vld [vmem:[%s8959_s1 + $0x5ec] ss:$16 sps:$4 sm:$0xff]  }
  0x91   : > { %1691 = vmatmul.mubr.bf16.vlgmr.msra.gmra.mrb[0].mxu0 %v408_v15  ;;  %1863 = vmatmul.mubr.bf16.vlgmr.msra.gmra.mrb[0].mxu1 %v408_v15  ;;  %v396_v15 = vld [vmem:[%s7185_s19 + $0x20] sm:$0xff] }
  0x92   : > { %1702 = vmatpush1.bf16.msra.mxu0 %v6155_v13  ;;  %1874 = vmatpush1.bf16.msra.mxu1 %v6158_v14  ;;  %v6245_v13 = vld [vmem:[%s8959_s1 + $0x5e0] ss:$16 sps:$4 sm:$0xff]   ;;  %v6248_v14 = vld [vmem:[%s8959_s1 + $0x5e8] ss:$16 sps:$4 sm:$0xff]  }
  0x93   : > { %1703 = vmatprep.subr.bf16.mxu0 %v6163_v16  ;;  %1875 = vmatprep.subr.bf16.mxu1 %v6166_v17  ;;  %v403_v16 = vld [vmem:[%s7185_s19 + $0x58] sm:$0xff]  ;;  %v6253_v17 = vld [vmem:[%s8959_s1 + $0x604] ss:$16 sps:$4 sm:$0xff]  }
  0x94   : > { %1733 = vmatprep.mubr.bf16.mxu0 %v411_v23  ;;  %1905 = vmatprep.mubr.bf16.mxu1 %v411_v23  ;;  %v410_v21 = vpack.c.bf16 %v403_v16, %v396_v15  ;;  %v6937_v23 = vmov 0   ;;  %v6385_v15 = vld [vmem:[%s8963_s5 + $0xa4] ss:$8 sps:$4 sm:$0xff]   ;;  %v611_v16 = vlaneseq }
  0x96   : > { %1704 = vmatpush1.bf16.msra.mxu0 %v6161_v19  ;;  %1876 = vmatpush1.bf16.msra.mxu1 %v6164_v20  ;;  %v6251_v19 = vld [vmem:[%s8959_s1 + $0x600] ss:$16 sps:$4 sm:$0xff]   ;;  %v6254_v20 = vld [vmem:[%s8959_s1 + $0x608] ss:$16 sps:$4 sm:$0xff]  }
  0x97   : > { %1705 = vmatprep.subr.bf16.mxu0 %v6169_v22  ;;  %1877 = vmatprep.subr.bf16.mxu1 %v6172_v24  ;;  %v6259_v22 = vld [vmem:[%s8961_s3 + $0x4] ss:$8 sps:$4 sm:$0xff]   ;;  %v398_v24 = vld [vmem:[%s7185_s19 + $0x30] sm:$0xff] }
  0x9a   : > { %1706 = vmatpush1.bf16.msra.mxu0 %v6167_v25  ;;  %1878 = vmatpush1.bf16.msra.mxu1 %v6170_v26  ;;  %v405_v25 = vld [vmem:[%s7185_s19 + $0x68] sm:$0xff] }
  0x9b   : > { %1707 = vmatprep.subr.bf16.mxu0 %v6175_v27  ;;  %1879 = vmatprep.subr.bf16.mxu1 %v6178_v28  ;;  %v6257_v26 = vld [vmem:[%s8961_s3] ss:$8 sps:$4 sm:$0xff]   ;;  %v412_v27 = vpack.c.bf16 %v405_v25, %v398_v24  ;;  %v6262_v28 = vld [vmem:[%s8961_s3 + $0x14] ss:$8 sps:$4 sm:$0xff]  }
  0x9c   : > { %v609_v24 = vld [vmem:[%s8960_s2] sm:$0xf] }
  0x9e   : > { %1708 = vmatpush1.bf16.msra.mxu0 %v6173_v29  ;;  %1880 = vmatpush1.bf16.msra.mxu1 %v6176_v30  ;;  %v6260_v29 = vld [vmem:[%s8961_s3 + $0x10] ss:$8 sps:$4 sm:$0xff]   ;;  %v6265_v30 = vld [vmem:[%s8961_s3 + $0x24] ss:$8 sps:$4 sm:$0xff]  }
  0x9f   : > { %1709 = vmatprep.subr.bf16.mxu0 %v6181_v31  ;;  %1881 = vmatprep.subr.bf16.mxu1 %v6184_v32  ;;  %v6263_v31 = vld [vmem:[%s8961_s3 + $0x20] ss:$8 sps:$4 sm:$0xff]   ;;  %v6268_v32 = vld [vmem:[%s8961_s3 + $0x34] ss:$8 sps:$4 sm:$0xff]  }
  0xa2   : > { %1710 = vmatpush1.bf16.msra.mxu0 %v6179_v33  ;;  %1882 = vmatpush1.bf16.msra.mxu1 %v6182_v34  ;;  %v6266_v33 = vld [vmem:[%s8961_s3 + $0x30] ss:$8 sps:$4 sm:$0xff]   ;;  %v6271_v34 = vld [vmem:[%s8961_s3 + $0x44] ss:$8 sps:$4 sm:$0xff]  }
  0xa3   : > { %1711 = vmatprep.subr.bf16.mxu0 %v6187_v35  ;;  %1883 = vmatprep.subr.bf16.mxu1 %v6190_v36  ;;  %v6269_v35 = vld [vmem:[%s8961_s3 + $0x40] ss:$8 sps:$4 sm:$0xff]   ;;  %v6274_v36 = vld [vmem:[%s8961_s3 + $0x54] ss:$8 sps:$4 sm:$0xff]  }
  0xa6   : > { %1712 = vmatpush1.bf16.msra.mxu0 %v6185_v37  ;;  %1884 = vmatpush1.bf16.msra.mxu1 %v6188_v38  ;;  %v6272_v37 = vld [vmem:[%s8961_s3 + $0x50] ss:$8 sps:$4 sm:$0xff]   ;;  %v6277_v38 = vld [vmem:[%s8961_s3 + $0x64] ss:$8 sps:$4 sm:$0xff]  }
  0xa7   : > { %1713 = vmatprep.subr.bf16.mxu0 %v6193_v39  ;;  %1885 = vmatprep.subr.bf16.mxu1 %v6196_v40  ;;  %v6275_v39 = vld [vmem:[%s8961_s3 + $0x60] ss:$8 sps:$4 sm:$0xff]   ;;  %v6280_v40 = vld [vmem:[%s8961_s3 + $0x74] ss:$8 sps:$4 sm:$0xff]  }
  0xaa   : > { %1714 = vmatpush1.bf16.msra.mxu0 %v6191_v41  ;;  %1886 = vmatpush1.bf16.msra.mxu1 %v6194_v42  ;;  %v6278_v41 = vld [vmem:[%s8961_s3 + $0x70] ss:$8 sps:$4 sm:$0xff]   ;;  %v6283_v42 = vld [vmem:[%s8961_s3 + $0x84] ss:$8 sps:$4 sm:$0xff]  }
  0xab   : > { %1715 = vmatprep.subr.bf16.mxu0 %v6199_v43  ;;  %1887 = vmatprep.subr.bf16.mxu1 %v6202_v44  ;;  %v6281_v43 = vld [vmem:[%s8961_s3 + $0x80] ss:$8 sps:$4 sm:$0xff]   ;;  %v6286_v44 = vld [vmem:[%s8961_s3 + $0x94] ss:$8 sps:$4 sm:$0xff]  }
  0xae   : > { %1716 = vmatpush1.bf16.msra.mxu0 %v6197_v45  ;;  %1888 = vmatpush1.bf16.msra.mxu1 %v6200_v46  ;;  %v6284_v45 = vld [vmem:[%s8961_s3 + $0x90] ss:$8 sps:$4 sm:$0xff]   ;;  %v6289_v46 = vld [vmem:[%s8961_s3 + $0xa4] ss:$8 sps:$4 sm:$0xff]  }
  0xaf   : > { %1717 = vmatprep.subr.bf16.mxu0 %v6205_v47  ;;  %1889 = vmatprep.subr.bf16.mxu1 %v6208_v48  ;;  %v6287_v47 = vld [vmem:[%s8961_s3 + $0xa0] ss:$8 sps:$4 sm:$0xff]   ;;  %v6292_v48 = vld [vmem:[%s8961_s3 + $0xb4] ss:$8 sps:$4 sm:$0xff]  }
  0xb2   : > { %1718 = vmatpush1.bf16.msra.mxu0 %v6203_v49  ;;  %1890 = vmatpush1.bf16.msra.mxu1 %v6206_v50  ;;  %v6290_v49 = vld [vmem:[%s8961_s3 + $0xb0] ss:$8 sps:$4 sm:$0xff]   ;;  %v6295_v50 = vld [vmem:[%s8961_s3 + $0xc4] ss:$8 sps:$4 sm:$0xff]  }
  0xb3   : > { %1719 = vmatprep.subr.bf16.mxu0 %v6211_v51  ;;  %1891 = vmatprep.subr.bf16.mxu1 %v6214_v52  ;;  %v6293_v51 = vld [vmem:[%s8961_s3 + $0xc0] ss:$8 sps:$4 sm:$0xff]   ;;  %v6298_v52 = vld [vmem:[%s8961_s3 + $0xd4] ss:$8 sps:$4 sm:$0xff]  }
  0xb6   : > { %1720 = vmatpush1.bf16.msra.mxu0 %v6209_v53  ;;  %1892 = vmatpush1.bf16.msra.mxu1 %v6212_v54  ;;  %v6296_v53 = vld [vmem:[%s8961_s3 + $0xd0] ss:$8 sps:$4 sm:$0xff]   ;;  %v6301_v54 = vld [vmem:[%s8961_s3 + $0xe4] ss:$8 sps:$4 sm:$0xff]  }
  0xb7   : > { %1721 = vmatprep.subr.bf16.mxu0 %v6217_v55  ;;  %1893 = vmatprep.subr.bf16.mxu1 %v6220_v56  ;;  %v6299_v55 = vld [vmem:[%s8961_s3 + $0xe0] ss:$8 sps:$4 sm:$0xff]   ;;  %v6304_v56 = vld [vmem:[%s8961_s3 + $0xf4] ss:$8 sps:$4 sm:$0xff]  }
  0xba   : > { %1722 = vmatpush1.bf16.msra.mxu0 %v6215_v57  ;;  %1894 = vmatpush1.bf16.msra.mxu1 %v6218_v58  ;;  %v6302_v57 = vld [vmem:[%s8961_s3 + $0xf0] ss:$8 sps:$4 sm:$0xff]   ;;  %v6307_v58 = vld [vmem:[%s8961_s3 + $0x104] ss:$8 sps:$4 sm:$0xff]  }
  0xbb   : > { %1723 = vmatprep.subr.bf16.mxu0 %v6223_v59  ;;  %1895 = vmatprep.subr.bf16.mxu1 %v6226_v60  ;;  %v6353_v59 = vld [vmem:[%s8963_s5] ss:$8 sps:$4 sm:$0xff]   ;;  %v6355_v60 = vld [vmem:[%s8963_s5 + $0x4] ss:$8 sps:$4 sm:$0xff]  }
  0xbe   : > { %1724 = vmatpush1.bf16.msra.mxu0 %v6221_v61  ;;  %1896 = vmatpush1.bf16.msra.mxu1 %v6224_v62  ;;  %v6358_v61 = vld [vmem:[%s8963_s5 + $0x14] ss:$8 sps:$4 sm:$0xff]   ;;  %v6356_v62 = vld [vmem:[%s8963_s5 + $0x10] ss:$8 sps:$4 sm:$0xff]  }
  0xbf   : > { %1725 = vmatprep.subr.bf16.mxu0 %v6229_v63  ;;  %1897 = vmatprep.subr.bf16.mxu1 %v6232_v0  ;;  %v6361_v63 = vld [vmem:[%s8963_s5 + $0x24] ss:$8 sps:$4 sm:$0xff]   ;;  %v6359_v0 = vld [vmem:[%s8963_s5 + $0x20] ss:$8 sps:$4 sm:$0xff]  }
  0xc2   : > { %1726 = vmatpush1.bf16.msra.mxu0 %v6227_v1  ;;  %1898 = vmatpush1.bf16.msra.mxu1 %v6230_v2  ;;  %v6364_v1 = vld [vmem:[%s8963_s5 + $0x34] ss:$8 sps:$4 sm:$0xff]   ;;  %v6362_v2 = vld [vmem:[%s8963_s5 + $0x30] ss:$8 sps:$4 sm:$0xff]  }
  0xc3   : > { %1727 = vmatprep.subr.bf16.mxu0 %v6235_v3  ;;  %1899 = vmatprep.subr.bf16.mxu1 %v6238_v4  ;;  %v6367_v3 = vld [vmem:[%s8963_s5 + $0x44] ss:$8 sps:$4 sm:$0xff]   ;;  %v6365_v4 = vld [vmem:[%s8963_s5 + $0x40] ss:$8 sps:$4 sm:$0xff]  }
  0xc6   : > { %1728 = vmatpush1.bf16.msra.mxu0 %v6233_v5  ;;  %1900 = vmatpush1.bf16.msra.mxu1 %v6236_v6  ;;  %v6370_v5 = vld [vmem:[%s8963_s5 + $0x54] ss:$8 sps:$4 sm:$0xff]   ;;  %v6368_v6 = vld [vmem:[%s8963_s5 + $0x50] ss:$8 sps:$4 sm:$0xff]  }
  0xc7   : > { %1729 = vmatprep.subr.bf16.mxu0 %v6241_v7  ;;  %1901 = vmatprep.subr.bf16.mxu1 %v6244_v8  ;;  %v6373_v7 = vld [vmem:[%s8963_s5 + $0x64] ss:$8 sps:$4 sm:$0xff]   ;;  %v6371_v8 = vld [vmem:[%s8963_s5 + $0x60] ss:$8 sps:$4 sm:$0xff]  }
  0xca   : > { %1730 = vmatpush1.bf16.msra.mxu0 %v6239_v9  ;;  %1902 = vmatpush1.bf16.msra.mxu1 %v6242_v10  ;;  %v6376_v9 = vld [vmem:[%s8963_s5 + $0x74] ss:$8 sps:$4 sm:$0xff]   ;;  %v6374_v10 = vld [vmem:[%s8963_s5 + $0x70] ss:$8 sps:$4 sm:$0xff]  }
  0xcb   : > { %1731 = vmatprep.subr.bf16.mxu0 %v6247_v11  ;;  %1903 = vmatprep.subr.bf16.mxu1 %v6250_v12  ;;  %v6379_v11 = vld [vmem:[%s8963_s5 + $0x84] ss:$8 sps:$4 sm:$0xff]   ;;  %v6377_v12 = vld [vmem:[%s8963_s5 + $0x80] ss:$8 sps:$4 sm:$0xff]  }
  0xce   : > { %1732 = vmatpush1.bf16.msra.mxu0 %v6245_v13  ;;  %1904 = vmatpush1.bf16.msra.mxu1 %v6248_v14  ;;  %v6382_v13 = vld [vmem:[%s8963_s5 + $0x94] ss:$8 sps:$4 sm:$0xff]   ;;  %v6380_v14 = vld [vmem:[%s8963_s5 + $0x90] ss:$8 sps:$4 sm:$0xff]  }
  0xcf   : > { %1744 = vmatprep.subr.bf16.mxu0 %v6253_v17  ;;  %1916 = vmatprep.subr.bf16.mxu1 %v6256_v18  ;;  %v6383_v17 = vld [vmem:[%s8963_s5 + $0xa0] ss:$8 sps:$4 sm:$0xff]   ;;  %v6388_v18 = vld [vmem:[%s8963_s5 + $0xb4] ss:$8 sps:$4 sm:$0xff]  }
  0xd1   : > { %1734 = vmatmul.mubr.bf16.vlgmr.msra.gmra.mrb[0].mxu0 %v410_v21  ;;  %1906 = vmatmul.mubr.bf16.vlgmr.msra.gmra.mrb[0].mxu1 %v410_v21  ;;  %v6391_v21 = vld [vmem:[%s8963_s5 + $0xc4] ss:$8 sps:$4 sm:$0xff]  }
  0xd2   : > { %1745 = vmatpush1.bf16.msra.mxu0 %v6251_v19  ;;  %1917 = vmatpush1.bf16.msra.mxu1 %v6254_v20  ;;  %v7825_v19 = vshrl.u32 %v611_v16, 7  ;;  %v6386_v20 = vld [vmem:[%s8963_s5 + $0xb0] ss:$8 sps:$4 sm:$0xff]  }
  0xd3   : > { %1776 = vmatprep.mubr.bf16.mxu0 %v6937_v23  ;;  %1948 = vmatprep.mubr.bf16.mxu1 %v6937_v23  ;;  %v6332_v16 = vld [vmem:[%s8961_s3 + $0x190] ss:$8 sps:$4 sm:$0xff]  }
  0xd4   : > { %2367 = vmatprep.subr.bf16.mxu0 %v6259_v22  ;;  %2663 = vmatprep.subr.bf16.mxu1 %v6355_v60  ;;  %v7834_v22 = vsub.s32 0, %v7825_v19  ;;  %v7837_v23 = vsub.s32 2, %v7825_v19  ;;  %v7843_v25 = vsub.s32 1, %v7825_v19 }
  0xdd   : > { %5403 = vmatmul.mubr.msk.bf16.vlgmr.msra.gmra.mrb[0].mxu0 %vm1611_vm0, %v412_v27  ;;  %5404 = vmatmul.mubr.msk.bf16.vlgmr.msra.gmra.mrb[0].mxu1 %vm1611_vm0, %v412_v27  ;;  %v6389_v27 = vld [vmem:[%s8963_s5 + $0xc0] ss:$8 sps:$4 sm:$0xff]  }
  0xde   : > { %2368 = vmatpush1.bf16.msra.mxu0 %v6257_v26  ;;  %2664 = vmatpush1.bf16.msra.mxu1 %v6353_v59  ;;  %v7846_v26 = vsub.s32 3, %v7825_v19 }
  0xdf   : > { %2369 = vmatprep.subr.bf16.mxu0 %v6262_v28  ;;  %2665 = vmatprep.subr.bf16.mxu1 %v6358_v61  ;;  %v6394_v28 = vld [vmem:[%s8963_s5 + $0xd4] ss:$8 sps:$4 sm:$0xff]  }
  0xe2   : > { %2370 = vmatpush1.bf16.msra.mxu0 %v6260_v29  ;;  %2666 = vmatpush1.bf16.msra.mxu1 %v6356_v62  ;;  %v614_v29 = vrot.slane %v609_v24, %v7834_v22  ;;  %v6305_v62 = vld [vmem:[%s8961_s3 + $0x100] ss:$8 sps:$4 sm:$0xff]  }
  0xe3   : > { %2371 = vmatprep.subr.bf16.mxu0 %v6265_v30  ;;  %2667 = vmatprep.subr.bf16.mxu1 %v6361_v63  ;;  %v622_v30 = vrot.slane %v609_v24, %v7837_v23  ;;  %v6310_v63 = vld [vmem:[%s8961_s3 + $0x114] ss:$8 sps:$4 sm:$0xff]  }
  0xe6   : > { %2372 = vmatpush1.bf16.msra.mxu0 %v6263_v31  ;;  %2668 = vmatpush1.bf16.msra.mxu1 %v6359_v0  ;;  %v618_v31 = vrot.slane %v609_v24, %v7843_v25  ;;  %v6308_v0 = vld [vmem:[%s8961_s3 + $0x110] ss:$8 sps:$4 sm:$0xff]  }
  0xe7   : > { %2373 = vmatprep.subr.bf16.mxu0 %v6268_v32  ;;  %2669 = vmatprep.subr.bf16.mxu1 %v6364_v1  ;;  %v626_v32 = vrot.slane %v609_v24, %v7846_v26  ;;  %v6313_v1 = vld [vmem:[%s8961_s3 + $0x124] ss:$8 sps:$4 sm:$0xff]  }
  0xe8   : > { %v6343_v24 = vld [vmem:[%s8961_s3 + $0x1c4] ss:$8 sps:$4 sm:$0xff]  }
  0xea   : > { %2374 = vmatpush1.bf16.msra.mxu0 %v6266_v33  ;;  %2670 = vmatpush1.bf16.msra.mxu1 %v6362_v2  ;;  %v6392_v33 = vld [vmem:[%s8963_s5 + $0xd0] ss:$8 sps:$4 sm:$0xff]   ;;  %v6311_v2 = vld [vmem:[%s8961_s3 + $0x120] ss:$8 sps:$4 sm:$0xff]  }
  0xeb   : > { %2375 = vmatprep.subr.bf16.mxu0 %v6271_v34  ;;  %2671 = vmatprep.subr.bf16.mxu1 %v6367_v3  ;;  %v6316_v3 = vld [vmem:[%s8961_s3 + $0x134] ss:$8 sps:$4 sm:$0xff]  }
  0xee   : > { %2376 = vmatpush1.bf16.msra.mxu0 %v6269_v35  ;;  %2672 = vmatpush1.bf16.msra.mxu1 %v6365_v4  ;;  %v6314_v4 = vld [vmem:[%s8961_s3 + $0x130] ss:$8 sps:$4 sm:$0xff]  }
  0xef   : > { %2377 = vmatprep.subr.bf16.mxu0 %v6274_v36  ;;  %2673 = vmatprep.subr.bf16.mxu1 %v6370_v5  ;;  %v6319_v5 = vld [vmem:[%s8961_s3 + $0x144] ss:$8 sps:$4 sm:$0xff]  }
  0xf2   : > { %2378 = vmatpush1.bf16.msra.mxu0 %v6272_v37  ;;  %2674 = vmatpush1.bf16.msra.mxu1 %v6368_v6  ;;  %v6317_v6 = vld [vmem:[%s8961_s3 + $0x140] ss:$8 sps:$4 sm:$0xff]  }
  0xf3   : > { %2379 = vmatprep.subr.bf16.mxu0 %v6277_v38  ;;  %2675 = vmatprep.subr.bf16.mxu1 %v6373_v7  ;;  %v6322_v7 = vld [vmem:[%s8961_s3 + $0x154] ss:$8 sps:$4 sm:$0xff]  }
  0xf6   : > { %2380 = vmatpush1.bf16.msra.mxu0 %v6275_v39  ;;  %2676 = vmatpush1.bf16.msra.mxu1 %v6371_v8  ;;  %v6320_v8 = vld [vmem:[%s8961_s3 + $0x150] ss:$8 sps:$4 sm:$0xff]  }
  0xf7   : > { %2381 = vmatprep.subr.bf16.mxu0 %v6280_v40  ;;  %2677 = vmatprep.subr.bf16.mxu1 %v6376_v9  ;;  %v6325_v9 = vld [vmem:[%s8961_s3 + $0x164] ss:$8 sps:$4 sm:$0xff]  }
  0xfa   : > { %2382 = vmatpush1.bf16.msra.mxu0 %v6278_v41  ;;  %2678 = vmatpush1.bf16.msra.mxu1 %v6374_v10  ;;  %v6323_v10 = vld [vmem:[%s8961_s3 + $0x160] ss:$8 sps:$4 sm:$0xff]  }
  0xfb   : > { %2383 = vmatprep.subr.bf16.mxu0 %v6283_v42  ;;  %2679 = vmatprep.subr.bf16.mxu1 %v6379_v11  ;;  %v6328_v11 = vld [vmem:[%s8961_s3 + $0x174] ss:$8 sps:$4 sm:$0xff]  }
  0xfe   : > { %2384 = vmatpush1.bf16.msra.mxu0 %v6281_v43  ;;  %2680 = vmatpush1.bf16.msra.mxu1 %v6377_v12  ;;  %v6326_v12 = vld [vmem:[%s8961_s3 + $0x170] ss:$8 sps:$4 sm:$0xff]  }
  0xff   : > { %2385 = vmatprep.subr.bf16.mxu0 %v6286_v44  ;;  %2681 = vmatprep.subr.bf16.mxu1 %v6382_v13  ;;  %v6331_v13 = vld [vmem:[%s8961_s3 + $0x184] ss:$8 sps:$4 sm:$0xff]  }
 0x102   : > { %2386 = vmatpush1.bf16.msra.mxu0 %v6284_v45  ;;  %2682 = vmatpush1.bf16.msra.mxu1 %v6380_v14  ;;  %v6329_v14 = vld [vmem:[%s8961_s3 + $0x180] ss:$8 sps:$4 sm:$0xff]  }
 0x103   : > { %2387 = vmatprep.subr.bf16.mxu0 %v6289_v46  ;;  %2683 = vmatprep.subr.bf16.mxu1 %v6385_v15  ;;  %v6334_v15 = vld [vmem:[%s8961_s3 + $0x194] ss:$8 sps:$4 sm:$0xff]  }
 0x106   : > { %2388 = vmatpush1.bf16.msra.mxu0 %v6287_v47  ;;  %2684 = vmatpush1.bf16.msra.mxu1 %v6383_v17  ;;  %v6337_v17 = vld [vmem:[%s8961_s3 + $0x1a4] ss:$8 sps:$4 sm:$0xff]  }
 0x107   : > { %2389 = vmatprep.subr.bf16.mxu0 %v6292_v48  ;;  %2685 = vmatprep.subr.bf16.mxu1 %v6388_v18  ;;  %v6335_v18 = vld [vmem:[%s8961_s3 + $0x1a0] ss:$8 sps:$4 sm:$0xff]  }
 0x10a   : > { %2390 = vmatpush1.bf16.msra.mxu0 %v6290_v49  ;;  %2686 = vmatpush1.bf16.msra.mxu1 %v6386_v20  ;;  %v6340_v20 = vld [vmem:[%s8961_s3 + $0x1b4] ss:$8 sps:$4 sm:$0xff]  }
 0x10b   : > { %2391 = vmatprep.subr.bf16.mxu0 %v6295_v50  ;;  %2687 = vmatprep.subr.bf16.mxu1 %v6391_v21  ;;  %v6338_v21 = vld [vmem:[%s8961_s3 + $0x1b0] ss:$8 sps:$4 sm:$0xff]  }
 0x10e   : > { %2392 = vmatpush1.bf16.msra.mxu0 %v6293_v51  ;;  %2688 = vmatpush1.bf16.msra.mxu1 %v6389_v27  ;;  %v6341_v27 = vld [vmem:[%s8961_s3 + $0x1c0] ss:$8 sps:$4 sm:$0xff]  }
 0x10f   : > { %2393 = vmatprep.subr.bf16.mxu0 %v6298_v52  ;;  %2689 = vmatprep.subr.bf16.mxu1 %v6394_v28  ;;  %v6346_v28 = vld [vmem:[%s8961_s3 + $0x1d4] ss:$8 sps:$4 sm:$0xff]  }
 0x112   : > { %2394 = vmatpush1.bf16.msra.mxu0 %v6296_v53  ;;  %2690 = vmatpush1.bf16.msra.mxu1 %v6392_v33  ;;  %v6350_v33 = vld [vmem:[%s8961_s3 + $0x1f0] ss:$8 sps:$4 sm:$0xff]  }
 0x113   : > { %2395 = vmatprep.subr.bf16.mxu0 %v6301_v54 }
 0x116   : > { %2396 = vmatpush1.bf16.msra.mxu0 %v6299_v55 }
 0x117   : > { %2397 = vmatprep.subr.bf16.mxu0 %v6304_v56 }
 0x11a   : > { %2398 = vmatpush1.bf16.msra.mxu0 %v6302_v57 }
 0x11b   : > { %2410 = vmatprep.subr.bf16.mxu0 %v6307_v58 }
 0x1b0   : > { %v1778_v34 = vpop.f32.mrb[0].mxu0  ;;  %v1950_v35 = vpop.f32.mrb[0].mxu1 }
 0x1b1   : > { %v5854_v36 = vadd.f32 %v1778_v34, %v614_v29  ;;  %v5858_v37 = vadd.f32 %v1950_v35, %v622_v30  ;;  %v1780_v38 = vpop.f32.mrb[1].mxu0  ;;  %v1952_v39 = vpop.f32.mrb[1].mxu1  ;;  %v6397_v34 = vld [vmem:[%s8963_s5 + $0xe4] ss:$8 sps:$4 sm:$0xff]   ;;  %v6395_v35 = vld [vmem:[%s8963_s5 + $0xe0] ss:$8 sps:$4 sm:$0xff]  }
 0x1b2   : > { %v5855_v40 = vadd.f32 %v1780_v38, %v618_v31  ;;  %v5859_v41 = vadd.f32 %v1952_v39, %v626_v32  ;;  %v1782_v42 = vpop.f32.mrb[2].mxu0  ;;  %v1954_v43 = vpop.f32.mrb[2].mxu1  ;;  %2691 = vmatprep.subr.bf16.mxu1 %v6397_v34  ;;  %v6403_v38 = vld [vmem:[%s8965_s7 + $0x4] ss:$16 sps:$4 sm:$0xff]   ;;  %v6404_v39 = vld [vmem:[%s8965_s7 + $0x8] ss:$16 sps:$4 sm:$0xff]  }
 0x1b3   : > { %v5856_v44 = vadd.f32 %v1782_v42, %v614_v29  ;;  %v5860_v45 = vadd.f32 %v1954_v43, %v622_v30  ;;  %v1784_v46 = vpop.f32.mrb[3].mxu0  ;;  %v1956_v47 = vpop.f32.mrb[3].mxu1  ;;  %v1959_v50 = vmax.f32 %v5854_v36, 0.0  ;;  %v1961_v51 = vmax.f32 %v5858_v37, 0.0  ;;  %v6344_v29 = vld [vmem:[%s8961_s3 + $0x1d0] ss:$8 sps:$4 sm:$0xff]   ;;  %2692 = vmatpush1.bf16.msra.mxu1 %v6395_v35 }
 0x1b4   : > { %v5857_v48 = vadd.f32 %v1784_v46, %v618_v31  ;;  %v5861_v49 = vadd.f32 %v1956_v47, %v626_v32  ;;  %v1960_v54 = vmax.f32 %v5855_v40, 0.0  ;;  %v1962_v55 = vmax.f32 %v5859_v41, 0.0  ;;  %v6349_v30 = vld [vmem:[%s8961_s3 + $0x1e4] ss:$8 sps:$4 sm:$0xff]   ;;  %v6347_v31 = vld [vmem:[%s8961_s3 + $0x1e0] ss:$8 sps:$4 sm:$0xff]  }
 0x1b5   : > { %v1963_v52 = vmax.f32 %v5856_v44, 0.0  ;;  %v1965_v53 = vmax.f32 %v5860_v45, 0.0  ;;  %v6352_v32 = vld [vmem:[%s8961_s3 + $0x1f4] ss:$8 sps:$4 sm:$0xff]   ;;  %v6398_v37 = vld [vmem:[%s8963_s5 + $0xf0] ss:$8 sps:$4 sm:$0xff]  }
 0x1b6   : > { %v1964_v56 = vmax.f32 %v5857_v48, 0.0  ;;  %v1966_v57 = vmax.f32 %v5861_v49, 0.0  ;;  %v6400_v36 = vld [vmem:[%s8963_s5 + $0xf4] ss:$8 sps:$4 sm:$0xff]   ;;  %v6410_v42 = vld [vmem:[%s8965_s7 + $0x28] ss:$16 sps:$4 sm:$0xff]  }
 0x1b7   : > { %v1967_v58 = vpack.c.bf16 %v1963_v52, %v1959_v50  ;;  %v7861_v59 = vpack.c.bf16 %v1965_v53, %v1961_v51  ;;  %2693 = vmatprep.subr.bf16.mxu1 %v6400_v36  ;;  %v6406_v40 = vld [vmem:[%s8965_s7 + $0xc] ss:$16 sps:$4 sm:$0xff]   ;;  %v6416_v44 = vld [vmem:[%s8965_s7 + $0x48] ss:$16 sps:$4 sm:$0xff]   ;;  %v6433_v34 = vld [vmem:[%s8965_s7 + $0xa4] ss:$16 sps:$4 sm:$0xff]  }
 0x1b8   : > { %v1968_v60 = vpack.c.bf16 %v1964_v56, %v1960_v54  ;;  %v1970_v61 = vpack.c.bf16 %v1966_v57, %v1962_v55  ;;  %2694 = vmatpush1.bf16.msra.mxu1 %v6398_v37  ;;  %v6412_v41 = vld [vmem:[%s8965_s7 + $0x2c] ss:$16 sps:$4 sm:$0xff]   ;;  %v6422_v46 = vld [vmem:[%s8965_s7 + $0x68] ss:$16 sps:$4 sm:$0xff]   ;;  %v6431_v35 = vld [vmem:[%s8965_s7 + $0xa0] ss:$16 sps:$4 sm:$0xff]  }
 0x1b9   : > { %3118 = vmatprep.subr.bf16.mxu1 %v6403_v38  ;;  %v6418_v43 = vld [vmem:[%s8965_s7 + $0x4c] ss:$16 sps:$4 sm:$0xff]   ;;  %v6428_v48 = vld [vmem:[%s8965_s7 + $0x88] ss:$16 sps:$4 sm:$0xff]   ;;  %v6439_v36 = vld [vmem:[%s8965_s7 + $0xc4] ss:$16 sps:$4 sm:$0xff]  }
 0x1ba   : > { %2399 = vmatprep.mubr.bf16.mxu0 %v1968_v60  ;;  %v6424_v45 = vld [vmem:[%s8965_s7 + $0x6c] ss:$16 sps:$4 sm:$0xff]   ;;  %v6434_v50 = vld [vmem:[%s8965_s7 + $0xa8] ss:$16 sps:$4 sm:$0xff]   ;;  %v6437_v37 = vld [vmem:[%s8965_s7 + $0xc0] ss:$16 sps:$4 sm:$0xff]  }
 0x1bb   : > { %2400 = vmatmul.mubr.bf16.vlgmr.msra.gmra.mrb[4].mxu0 %v1967_v58  ;;  %v6430_v47 = vld [vmem:[%s8965_s7 + $0x8c] ss:$16 sps:$4 sm:$0xff]   ;;  %v6440_v52 = vld [vmem:[%s8965_s7 + $0xc8] ss:$16 sps:$4 sm:$0xff]   ;;  %v6445_v38 = vld [vmem:[%s8965_s7 + $0xe4] ss:$16 sps:$4 sm:$0xff]  }
 0x1bc   : > { %2411 = vmatpush1.bf16.msra.mxu0 %v6305_v62  ;;  %2442 = vmatprep.mubr.bf16.mxu0 %v1970_v61  ;;  %v6436_v49 = vld [vmem:[%s8965_s7 + $0xac] ss:$16 sps:$4 sm:$0xff]   ;;  %v6446_v54 = vld [vmem:[%s8965_s7 + $0xe8] ss:$16 sps:$4 sm:$0xff]  }
 0x1bd   : > { %2412 = vmatprep.subr.bf16.mxu0 %v6310_v63  ;;  %v6442_v51 = vld [vmem:[%s8965_s7 + $0xcc] ss:$16 sps:$4 sm:$0xff]   ;;  %v6452_v56 = vld [vmem:[%s8965_s7 + $0x108] ss:$16 sps:$4 sm:$0xff]  }
 0x1be   : > { %v6448_v53 = vld [vmem:[%s8965_s7 + $0xec] ss:$16 sps:$4 sm:$0xff]   ;;  %v6458_v58 = vld [vmem:[%s8965_s7 + $0x128] ss:$16 sps:$4 sm:$0xff]  }
 0x1bf   : > { %v6454_v55 = vld [vmem:[%s8965_s7 + $0x10c] ss:$16 sps:$4 sm:$0xff]   ;;  %v6464_v60 = vld [vmem:[%s8965_s7 + $0x148] ss:$16 sps:$4 sm:$0xff]  }
 0x1c0   : > { %2413 = vmatpush1.bf16.msra.mxu0 %v6308_v0  ;;  %v6460_v57 = vld [vmem:[%s8965_s7 + $0x12c] ss:$16 sps:$4 sm:$0xff]   ;;  %v6470_v62 = vld [vmem:[%s8965_s7 + $0x168] ss:$16 sps:$4 sm:$0xff]  }
 0x1c1   : > { %2414 = vmatprep.subr.bf16.mxu0 %v6313_v1  ;;  %v6472_v61 = vld [vmem:[%s8965_s7 + $0x16c] ss:$16 sps:$4 sm:$0xff]   ;;  %v6476_v0 = vld [vmem:[%s8965_s7 + $0x188] ss:$16 sps:$4 sm:$0xff]  }
 0x1c2   : > { %v6478_v63 = vld [vmem:[%s8965_s7 + $0x18c] ss:$16 sps:$4 sm:$0xff]  }
 0x1c3   : > { %v6484_v1 = vld [vmem:[%s8965_s7 + $0x1ac] ss:$16 sps:$4 sm:$0xff]  }
 0x1c4   : > { %2415 = vmatpush1.bf16.msra.mxu0 %v6311_v2  ;;  %v6482_v2 = vld [vmem:[%s8965_s7 + $0x1a8] ss:$16 sps:$4 sm:$0xff]  }
 0x1c5   : > { %2416 = vmatprep.subr.bf16.mxu0 %v6316_v3  ;;  %v2035_v3 = vld [vmem:[%s8962_s4] sm:$0x3] }
 0x1c8   : > { %2417 = vmatpush1.bf16.msra.mxu0 %v6314_v4  ;;  %v2040_v4 = vrot.slane %v2035_v3, %v7834_v22 }
 0x1c9   : > { %2418 = vmatprep.subr.bf16.mxu0 %v6319_v5  ;;  %v2044_v5 = vrot.slane %v2035_v3, %v7843_v25 }
 0x1cc   : > { %2419 = vmatpush1.bf16.msra.mxu0 %v6317_v6 }
 0x1cd   : > { %2420 = vmatprep.subr.bf16.mxu0 %v6322_v7 }
 0x1d0   : > { %2421 = vmatpush1.bf16.msra.mxu0 %v6320_v8 }
 0x1d1   : > { %2422 = vmatprep.subr.bf16.mxu0 %v6325_v9 }
 0x1d4   : > { %2423 = vmatpush1.bf16.msra.mxu0 %v6323_v10 }
 0x1d5   : > { %2424 = vmatprep.subr.bf16.mxu0 %v6328_v11 }
 0x1d8   : > { %2425 = vmatpush1.bf16.msra.mxu0 %v6326_v12 }
 0x1d9   : > { %2426 = vmatprep.subr.bf16.mxu0 %v6331_v13 }
 0x1dc   : > { %2427 = vmatpush1.bf16.msra.mxu0 %v6329_v14 }
 0x1dd   : > { %2428 = vmatprep.subr.bf16.mxu0 %v6334_v15 }
 0x1e0   : > { %2429 = vmatpush1.bf16.msra.mxu0 %v6332_v16 }
 0x1e1   : > { %2430 = vmatprep.subr.bf16.mxu0 %v6337_v17 }
 0x1e4   : > { %2431 = vmatpush1.bf16.msra.mxu0 %v6335_v18 }
 0x1e5   : > { %2432 = vmatprep.subr.bf16.mxu0 %v6340_v20 }
 0x1e8   : > { %2433 = vmatpush1.bf16.msra.mxu0 %v6338_v21  ;;  %v6401_v21 = vld [vmem:[%s8965_s7] ss:$16 sps:$4 sm:$0xff]  }
 0x1e9   : > { %2434 = vmatprep.subr.bf16.mxu0 %v6343_v24  ;;  %v6409_v24 = vld [vmem:[%s8965_s7 + $0x24] ss:$16 sps:$4 sm:$0xff]  }
 0x1ec   : > { %2435 = vmatpush1.bf16.msra.mxu0 %v6341_v27  ;;  %v6407_v27 = vld [vmem:[%s8965_s7 + $0x20] ss:$16 sps:$4 sm:$0xff]  }
 0x1ed   : > { %2436 = vmatprep.subr.bf16.mxu0 %v6346_v28  ;;  %v6415_v28 = vld [vmem:[%s8965_s7 + $0x44] ss:$16 sps:$4 sm:$0xff]  }
 0x1f0   : > { %2437 = vmatpush1.bf16.msra.mxu0 %v6344_v29  ;;  %v6413_v29 = vld [vmem:[%s8965_s7 + $0x40] ss:$16 sps:$4 sm:$0xff]  }
 0x1f1   : > { %2438 = vmatprep.subr.bf16.mxu0 %v6349_v30  ;;  %v6421_v30 = vld [vmem:[%s8965_s7 + $0x64] ss:$16 sps:$4 sm:$0xff]  }
 0x1f4   : > { %2439 = vmatpush1.bf16.msra.mxu0 %v6347_v31  ;;  %v6419_v31 = vld [vmem:[%s8965_s7 + $0x60] ss:$16 sps:$4 sm:$0xff]  }
 0x1f5   : > { %2440 = vmatprep.subr.bf16.mxu0 %v6352_v32  ;;  %v6427_v32 = vld [vmem:[%s8965_s7 + $0x84] ss:$16 sps:$4 sm:$0xff]  }
 0x1f8   : > { %2441 = vmatpush1.bf16.msra.mxu0 %v6350_v33  ;;  %v6425_v33 = vld [vmem:[%s8965_s7 + $0x80] ss:$16 sps:$4 sm:$0xff]  }
 0x1f9   : > { %3161 = vmatprep.subr.bf16.mxu0 %v6406_v40  ;;  %v6451_v40 = vld [vmem:[%s8965_s7 + $0x104] ss:$16 sps:$4 sm:$0xff]  }
 0x1fb   : > { %2443 = vmatmul.mubr.bf16.vlgmr.msra.gmra.mrb[4].mxu0 %v7861_v59  ;;  %v6466_v59 = vld [vmem:[%s8965_s7 + $0x14c] ss:$16 sps:$4 sm:$0xff]  }
 0x1fc   : > { %3162 = vmatpush1.bf16.msra.mxu0 %v6404_v39  ;;  %v6443_v39 = vld [vmem:[%s8965_s7 + $0xe0] ss:$16 sps:$4 sm:$0xff]  }
 0x1fd   : > { %3163 = vmatprep.subr.bf16.mxu0 %v6412_v41  ;;  %v6449_v41 = vld [vmem:[%s8965_s7 + $0x100] ss:$16 sps:$4 sm:$0xff]  }
 0x200   : > { %3164 = vmatpush1.bf16.msra.mxu0 %v6410_v42  ;;  %v6457_v42 = vld [vmem:[%s8965_s7 + $0x124] ss:$16 sps:$4 sm:$0xff]  }
 0x201   : > { %3165 = vmatprep.subr.bf16.mxu0 %v6418_v43  ;;  %v6455_v43 = vld [vmem:[%s8965_s7 + $0x120] ss:$16 sps:$4 sm:$0xff]  }
 0x204   : > { %3166 = vmatpush1.bf16.msra.mxu0 %v6416_v44  ;;  %v6463_v44 = vld [vmem:[%s8965_s7 + $0x144] ss:$16 sps:$4 sm:$0xff]  }
 0x205   : > { %3167 = vmatprep.subr.bf16.mxu0 %v6424_v45  ;;  %v6461_v45 = vld [vmem:[%s8965_s7 + $0x140] ss:$16 sps:$4 sm:$0xff]  }
 0x208   : > { %3168 = vmatpush1.bf16.msra.mxu0 %v6422_v46  ;;  %v6469_v46 = vld [vmem:[%s8965_s7 + $0x164] ss:$16 sps:$4 sm:$0xff]  }
 0x209   : > { %3169 = vmatprep.subr.bf16.mxu0 %v6430_v47  ;;  %v6467_v47 = vld [vmem:[%s8965_s7 + $0x160] ss:$16 sps:$4 sm:$0xff]  }
 0x20c   : > { %3170 = vmatpush1.bf16.msra.mxu0 %v6428_v48  ;;  %v6475_v48 = vld [vmem:[%s8965_s7 + $0x184] ss:$16 sps:$4 sm:$0xff]  }
 0x20d   : > { %3171 = vmatprep.subr.bf16.mxu0 %v6436_v49  ;;  %v6473_v49 = vld [vmem:[%s8965_s7 + $0x180] ss:$16 sps:$4 sm:$0xff]  }
 0x210   : > { %3172 = vmatpush1.bf16.msra.mxu0 %v6434_v50  ;;  %v6481_v50 = vld [vmem:[%s8965_s7 + $0x1a4] ss:$16 sps:$4 sm:$0xff]  }
 0x211   : > { %3173 = vmatprep.subr.bf16.mxu0 %v6442_v51  ;;  %v6479_v51 = vld [vmem:[%s8965_s7 + $0x1a0] ss:$16 sps:$4 sm:$0xff]  }
 0x214   : > { %3174 = vmatpush1.bf16.msra.mxu0 %v6440_v52  ;;  %v6487_v52 = vld [vmem:[%s8965_s7 + $0x1c4] ss:$16 sps:$4 sm:$0xff]  }
 0x215   : > { %3175 = vmatprep.subr.bf16.mxu0 %v6448_v53  ;;  %v6490_v53 = vld [vmem:[%s8965_s7 + $0x1cc] ss:$16 sps:$4 sm:$0xff]  }
 0x218   : > { %3176 = vmatpush1.bf16.msra.mxu0 %v6446_v54  ;;  %v6485_v54 = vld [vmem:[%s8965_s7 + $0x1c0] ss:$16 sps:$4 sm:$0xff]  }
 0x219   : > { %3177 = vmatprep.subr.bf16.mxu0 %v6454_v55  ;;  %v6488_v55 = vld [vmem:[%s8965_s7 + $0x1c8] ss:$16 sps:$4 sm:$0xff]  }
 0x21c   : > { %3178 = vmatpush1.bf16.msra.mxu0 %v6452_v56  ;;  %v6493_v56 = vld [vmem:[%s8965_s7 + $0x1e4] ss:$16 sps:$4 sm:$0xff]  }
 0x21d   : > { %3179 = vmatprep.subr.bf16.mxu0 %v6460_v57  ;;  %v6496_v57 = vld [vmem:[%s8965_s7 + $0x1ec] ss:$16 sps:$4 sm:$0xff]  }
 0x220   : > { %3180 = vmatpush1.bf16.msra.mxu0 %v6458_v58  ;;  %v6491_v58 = vld [vmem:[%s8965_s7 + $0x1e0] ss:$16 sps:$4 sm:$0xff]  }
 0x221   : > { %3181 = vmatprep.subr.bf16.mxu0 %v6466_v59  ;;  %v6494_v59 = vld [vmem:[%s8965_s7 + $0x1e8] ss:$16 sps:$4 sm:$0xff]  }
 0x224   : > { %3182 = vmatpush1.bf16.msra.mxu0 %v6464_v60  ;;  %v6499_v60 = vld [vmem:[%s8967_s9 + $0x4] ss:$28 sps:$4 sm:$0xff]  }
 0x225   : > { %3183 = vmatprep.subr.bf16.mxu0 %v6472_v61  ;;  %v6502_v61 = vld [vmem:[%s8967_s9 + $0xc] ss:$28 sps:$4 sm:$0xff]  }
 0x228   : > { %3184 = vmatpush1.bf16.msra.mxu0 %v6470_v62  ;;  %v2491_v62 = vld [vmem:[%s8964_s6] sm:$0x3] }
 0x229   : > { %3185 = vmatprep.subr.bf16.mxu0 %v6478_v63  ;;  %v2496_v63 = vrot.slane %v2491_v62, %v7834_v22 }
 0x22c   : > { %3186 = vmatpush1.bf16.msra.mxu0 %v6476_v0  ;;  %v2500_v0 = vrot.slane %v2491_v62, %v7843_v25  ;;  %v6565_v62 = vld [vmem:[%s8967_s9 + $0x26c] ss:$28 sps:$4 sm:$0xff]  }
 0x22d   : > { %3187 = vmatprep.subr.bf16.mxu0 %v6484_v1 }
 0x230   : > { %3188 = vmatpush1.bf16.msra.mxu0 %v6482_v2 }
 0x231   : > { %3189 = vmatprep.subr.bf16.mxu0 %v6490_v53  ;;  %v6548_v53 = vld [vmem:[%s8967_s9 + $0x1c8] ss:$28 sps:$4 sm:$0xff]  }
 0x234   : > { %3190 = vmatpush1.bf16.msra.mxu0 %v6488_v55  ;;  %v6556_v55 = vld [vmem:[%s8967_s9 + $0x204] ss:$28 sps:$4 sm:$0xff]  }
 0x235   : > { %3191 = vmatprep.subr.bf16.mxu0 %v6496_v57  ;;  %v6554_v57 = vld [vmem:[%s8967_s9 + $0x200] ss:$28 sps:$4 sm:$0xff]  }
 0x238   : > { %3192 = vmatpush1.bf16.msra.mxu0 %v6494_v59  ;;  %v6562_v59 = vld [vmem:[%s8967_s9 + $0x23c] ss:$28 sps:$4 sm:$0xff]  }
 0x239   : > { %4747 = vmatprep.subr.bf16.mxu0 %v6502_v61  ;;  %v6560_v61 = vld [vmem:[%s8967_s9 + $0x238] ss:$28 sps:$4 sm:$0xff]  }
 0x2ce   : > { %v2444_v6 = vpop.f32.mrb[4].mxu0 }
 0x2cf   : > { %v5862_v7 = vadd.f32 %v2444_v6, %v2040_v4  ;;  %v2446_v8 = vpop.f32.mrb[5].mxu0 }
 0x2d0   : > { %v5863_v9 = vadd.f32 %v2446_v8, %v2044_v5  ;;  %v2448_v10 = vpop.f32.mrb[6].mxu0 }
 0x2d1   : > { %v5864_v11 = vadd.f32 %v2448_v10, %v2040_v4  ;;  %v2450_v12 = vpop.f32.mrb[7].mxu0  ;;  %v2453_v14 = vmax.f32 %v5862_v7, 0.0 }
 0x2d2   : > { %v5865_v13 = vadd.f32 %v2450_v12, %v2044_v5  ;;  %v2454_v16 = vmax.f32 %v5863_v9, 0.0 }
 0x2d3   : > { %v2455_v15 = vmax.f32 %v5864_v11, 0.0 }
 0x2d4   : > { %v2456_v17 = vmax.f32 %v5865_v13, 0.0 }
 0x2d5   : > { %v2457_v18 = vpack.c.bf16 %v2455_v15, %v2453_v14  ;;  %v6497_v15 = vld [vmem:[%s8967_s9] ss:$28 sps:$4 sm:$0xff]  }
 0x2d6   : > { %v2458_v20 = vpack.c.bf16 %v2456_v17, %v2454_v16  ;;  %v6500_v16 = vld [vmem:[%s8967_s9 + $0x8] ss:$28 sps:$4 sm:$0xff]   ;;  %v6505_v17 = vld [vmem:[%s8967_s9 + $0x3c] ss:$28 sps:$4 sm:$0xff]  }
 0x2d8   : > { %2695 = vmatprep.mubr.bf16.mxu1 %v2458_v20  ;;  %v6503_v20 = vld [vmem:[%s8967_s9 + $0x38] ss:$28 sps:$4 sm:$0xff]  }
 0x2d9   : > { %2696 = vmatmul.mubr.bf16.vlgmr.msra.gmra.mrb[4].mxu1 %v2457_v18  ;;  %v6508_v18 = vld [vmem:[%s8967_s9 + $0x44] ss:$28 sps:$4 sm:$0xff]  }
 0x2da   : > { %3119 = vmatpush1.bf16.msra.mxu1 %v6401_v21  ;;  %v6506_v21 = vld [vmem:[%s8967_s9 + $0x40] ss:$28 sps:$4 sm:$0xff]  }
 0x2db   : > { %3120 = vmatprep.subr.bf16.mxu1 %v6409_v24  ;;  %v6511_v24 = vld [vmem:[%s8967_s9 + $0x74] ss:$28 sps:$4 sm:$0xff]  }
 0x2de   : > { %3121 = vmatpush1.bf16.msra.mxu1 %v6407_v27  ;;  %v6514_v27 = vld [vmem:[%s8967_s9 + $0x7c] ss:$28 sps:$4 sm:$0xff]  }
 0x2df   : > { %3122 = vmatprep.subr.bf16.mxu1 %v6415_v28  ;;  %v6509_v28 = vld [vmem:[%s8967_s9 + $0x70] ss:$28 sps:$4 sm:$0xff]  }
 0x2e2   : > { %3123 = vmatpush1.bf16.msra.mxu1 %v6413_v29  ;;  %v6512_v29 = vld [vmem:[%s8967_s9 + $0x78] ss:$28 sps:$4 sm:$0xff]  }
 0x2e3   : > { %3124 = vmatprep.subr.bf16.mxu1 %v6421_v30  ;;  %v6517_v30 = vld [vmem:[%s8967_s9 + $0xac] ss:$28 sps:$4 sm:$0xff]  }
 0x2e6   : > { %3125 = vmatpush1.bf16.msra.mxu1 %v6419_v31  ;;  %v6520_v31 = vld [vmem:[%s8967_s9 + $0xb4] ss:$28 sps:$4 sm:$0xff]  }
 0x2e7   : > { %3126 = vmatprep.subr.bf16.mxu1 %v6427_v32  ;;  %v6515_v32 = vld [vmem:[%s8967_s9 + $0xa8] ss:$28 sps:$4 sm:$0xff]  }
 0x2ea   : > { %3127 = vmatpush1.bf16.msra.mxu1 %v6425_v33  ;;  %v6518_v33 = vld [vmem:[%s8967_s9 + $0xb0] ss:$28 sps:$4 sm:$0xff]  }
 0x2eb   : > { %3128 = vmatprep.subr.bf16.mxu1 %v6433_v34  ;;  %v6523_v34 = vld [vmem:[%s8967_s9 + $0xe4] ss:$28 sps:$4 sm:$0xff]  }
 0x2ee   : > { %3129 = vmatpush1.bf16.msra.mxu1 %v6431_v35  ;;  %v6526_v35 = vld [vmem:[%s8967_s9 + $0xec] ss:$28 sps:$4 sm:$0xff]  }
 0x2ef   : > { %3130 = vmatprep.subr.bf16.mxu1 %v6439_v36  ;;  %v6521_v36 = vld [vmem:[%s8967_s9 + $0xe0] ss:$28 sps:$4 sm:$0xff]  }
 0x2f2   : > { %3131 = vmatpush1.bf16.msra.mxu1 %v6437_v37  ;;  %v6524_v37 = vld [vmem:[%s8967_s9 + $0xe8] ss:$28 sps:$4 sm:$0xff]  }
 0x2f3   : > { %3132 = vmatprep.subr.bf16.mxu1 %v6445_v38  ;;  %v6529_v38 = vld [vmem:[%s8967_s9 + $0x11c] ss:$28 sps:$4 sm:$0xff]  }
 0x2f6   : > { %3133 = vmatpush1.bf16.msra.mxu1 %v6443_v39  ;;  %v6532_v39 = vld [vmem:[%s8967_s9 + $0x124] ss:$28 sps:$4 sm:$0xff]  }
 0x2f7   : > { %3134 = vmatprep.subr.bf16.mxu1 %v6451_v40  ;;  %v6527_v40 = vld [vmem:[%s8967_s9 + $0x118] ss:$28 sps:$4 sm:$0xff]  }
 0x2fa   : > { %3135 = vmatpush1.bf16.msra.mxu1 %v6449_v41  ;;  %v6530_v41 = vld [vmem:[%s8967_s9 + $0x120] ss:$28 sps:$4 sm:$0xff]  }
 0x2fb   : > { %3136 = vmatprep.subr.bf16.mxu1 %v6457_v42  ;;  %v6535_v42 = vld [vmem:[%s8967_s9 + $0x154] ss:$28 sps:$4 sm:$0xff]  }
 0x2fe   : > { %3137 = vmatpush1.bf16.msra.mxu1 %v6455_v43  ;;  %v6538_v43 = vld [vmem:[%s8967_s9 + $0x15c] ss:$28 sps:$4 sm:$0xff]  }
 0x2ff   : > { %3138 = vmatprep.subr.bf16.mxu1 %v6463_v44  ;;  %v6533_v44 = vld [vmem:[%s8967_s9 + $0x150] ss:$28 sps:$4 sm:$0xff]  }
 0x302   : > { %3139 = vmatpush1.bf16.msra.mxu1 %v6461_v45  ;;  %v6536_v45 = vld [vmem:[%s8967_s9 + $0x158] ss:$28 sps:$4 sm:$0xff]  }
 0x303   : > { %3140 = vmatprep.subr.bf16.mxu1 %v6469_v46  ;;  %v6541_v46 = vld [vmem:[%s8967_s9 + $0x18c] ss:$28 sps:$4 sm:$0xff]  }
 0x306   : > { %3141 = vmatpush1.bf16.msra.mxu1 %v6467_v47  ;;  %v6544_v47 = vld [vmem:[%s8967_s9 + $0x194] ss:$28 sps:$4 sm:$0xff]  }
 0x307   : > { %3142 = vmatprep.subr.bf16.mxu1 %v6475_v48  ;;  %v6539_v48 = vld [vmem:[%s8967_s9 + $0x188] ss:$28 sps:$4 sm:$0xff]  }
 0x30a   : > { %3143 = vmatpush1.bf16.msra.mxu1 %v6473_v49  ;;  %v6542_v49 = vld [vmem:[%s8967_s9 + $0x190] ss:$28 sps:$4 sm:$0xff]  }
 0x30b   : > { %3144 = vmatprep.subr.bf16.mxu1 %v6481_v50  ;;  %v6547_v50 = vld [vmem:[%s8967_s9 + $0x1c4] ss:$28 sps:$4 sm:$0xff]  }
 0x30e   : > { %3145 = vmatpush1.bf16.msra.mxu1 %v6479_v51  ;;  %v6550_v51 = vld [vmem:[%s8967_s9 + $0x1cc] ss:$28 sps:$4 sm:$0xff]  }
 0x30f   : > { %3146 = vmatprep.subr.bf16.mxu1 %v6487_v52  ;;  %v6545_v52 = vld [vmem:[%s8967_s9 + $0x1c0] ss:$28 sps:$4 sm:$0xff]  }
 0x312   : > { %3147 = vmatpush1.bf16.msra.mxu1 %v6485_v54  ;;  %v6553_v54 = vld [vmem:[%s8967_s9 + $0x1fc] ss:$28 sps:$4 sm:$0xff]  }
 0x313   : > { %3148 = vmatprep.subr.bf16.mxu1 %v6493_v56  ;;  %v6551_v56 = vld [vmem:[%s8967_s9 + $0x1f8] ss:$28 sps:$4 sm:$0xff]  }
 0x316   : > { %3149 = vmatpush1.bf16.msra.mxu1 %v6491_v58  ;;  %v6559_v58 = vld [vmem:[%s8967_s9 + $0x234] ss:$28 sps:$4 sm:$0xff]  }
 0x317   : > { %4661 = vmatprep.subr.bf16.mxu1 %v6499_v60  ;;  %v6557_v60 = vld [vmem:[%s8967_s9 + $0x230] ss:$28 sps:$4 sm:$0xff]  }
 0x3ac   : > { %v2697_v1 = vpop.f32.mrb[4].mxu1 }
 0x3ad   : > { %v2698_v2 = vadd.f32 %v2697_v1, %v2496_v63  ;;  %v2699_v3 = vpop.f32.mrb[5].mxu1  ;;  %v6566_v1 = vld [vmem:[%s8967_s9 + $0x270] ss:$28 sps:$4 sm:$0xff]  }
 0x3ae   : > { %v2700_v4 = vadd.f32 %v2699_v3, %v2500_v0  ;;  %v2701_v5 = vpop.f32.mrb[6].mxu1  ;;  %v6574_v3 = vld [vmem:[%s8967_s9 + $0x2ac] ss:$28 sps:$4 sm:$0xff]  }
 0x3af   : > { %v2702_v6 = vadd.f32 %v2701_v5, %v2496_v63  ;;  %v2703_v7 = vpop.f32.mrb[7].mxu1  ;;  %v2706_v9 = vmax.f32 %v2698_v2, 0.0  ;;  %v6568_v63 = vld [vmem:[%s8967_s9 + $0x274] ss:$28 sps:$4 sm:$0xff]   ;;  %v6571_v2 = vld [vmem:[%s8967_s9 + $0x2a4] ss:$28 sps:$4 sm:$0xff]  }
 0x3b0   : > { %v2704_v8 = vadd.f32 %v2703_v7, %v2500_v0  ;;  %v2707_v11 = vmax.f32 %v2700_v4, 0.0  ;;  %v6563_v0 = vld [vmem:[%s8967_s9 + $0x268] ss:$28 sps:$4 sm:$0xff]   ;;  %v6569_v4 = vld [vmem:[%s8967_s9 + $0x2a0] ss:$28 sps:$4 sm:$0xff]  }
 0x3b1   : > { %v2708_v10 = vmax.f32 %v2702_v6, 0.0  ;;  %v6572_v5 = vld [vmem:[%s8967_s9 + $0x2a8] ss:$28 sps:$4 sm:$0xff]   ;;  %v6577_v6 = vld [vmem:[%s8967_s9 + $0x2dc] ss:$28 sps:$4 sm:$0xff]  }
 0x3b2   : > { %v2709_v12 = vmax.f32 %v2704_v8, 0.0  ;;  %v6580_v7 = vld [vmem:[%s8967_s9 + $0x2e4] ss:$28 sps:$4 sm:$0xff]   ;;  %v6575_v8 = vld [vmem:[%s8967_s9 + $0x2d8] ss:$28 sps:$4 sm:$0xff]  }
 0x3b3   : > { %v2710_v13 = vpack.c.bf16 %v2708_v10, %v2706_v9  ;;  %v6578_v9 = vld [vmem:[%s8967_s9 + $0x2e0] ss:$28 sps:$4 sm:$0xff]   ;;  %v6583_v10 = vld [vmem:[%s8967_s9 + $0x314] ss:$28 sps:$4 sm:$0xff]  }
 0x3b4   : > { %v2711_v14 = vpack.c.bf16 %v2709_v12, %v2707_v11  ;;  %v6586_v11 = vld [vmem:[%s8967_s9 + $0x31c] ss:$28 sps:$4 sm:$0xff]   ;;  %v6581_v12 = vld [vmem:[%s8967_s9 + $0x310] ss:$28 sps:$4 sm:$0xff]  }
 0x3b6   : > { %3150 = vmatprep.mubr.bf16.mxu1 %v2711_v14  ;;  %3193 = vmatprep.mubr.bf16.mxu0 %v2711_v14  ;;  %v6589_v14 = vld [vmem:[%s8967_s9 + $0x34c] ss:$28 sps:$4 sm:$0xff]  }
 0x3b7   : > { %3151 = vmatmul.mubr.bf16.vlgmr.msra.gmra.mrb[8].mxu1 %v2710_v13  ;;  %3194 = vmatmul.mubr.bf16.vlgmr.msra.gmra.mrb[8].mxu0 %v2710_v13  ;;  %v6584_v13 = vld [vmem:[%s8967_s9 + $0x318] ss:$28 sps:$4 sm:$0xff]  }
 0x3b8   : > { %4662 = vmatpush1.bf16.msra.mxu1 %v6497_v15  ;;  %4748 = vmatpush1.bf16.msra.mxu0 %v6500_v16  ;;  %v6592_v15 = vld [vmem:[%s8967_s9 + $0x354] ss:$28 sps:$4 sm:$0xff]   ;;  %v6587_v16 = vld [vmem:[%s8967_s9 + $0x348] ss:$28 sps:$4 sm:$0xff]  }
 0x3b9   : > { %4663 = vmatprep.subr.bf16.mxu1 %v6505_v17  ;;  %4749 = vmatprep.subr.bf16.mxu0 %v6508_v18  ;;  %v6590_v17 = vld [vmem:[%s8967_s9 + $0x350] ss:$28 sps:$4 sm:$0xff]   ;;  %v6595_v18 = vld [vmem:[%s8967_s9 + $0x384] ss:$28 sps:$4 sm:$0xff]  }
 0x3bc   : > { %4664 = vmatpush1.bf16.msra.mxu1 %v6503_v20  ;;  %4750 = vmatpush1.bf16.msra.mxu0 %v6506_v21  ;;  %v6598_v20 = vld [vmem:[%s8967_s9 + $0x38c] ss:$28 sps:$4 sm:$0xff]   ;;  %v2776_v21 = vld [vmem:[%s8966_s8] sm:$0xf] }
 0x3bd   : > { %4665 = vmatprep.subr.bf16.mxu1 %v6511_v24  ;;  %4751 = vmatprep.subr.bf16.mxu0 %v6514_v27  ;;  %v2781_v24 = vrot.slane %v2776_v21, %v7834_v22  ;;  %v2789_v27 = vrot.slane %v2776_v21, %v7837_v23 }
 0x3c0   : > { %4666 = vmatpush1.bf16.msra.mxu1 %v6509_v28  ;;  %4752 = vmatpush1.bf16.msra.mxu0 %v6512_v29  ;;  %v2785_v28 = vrot.slane %v2776_v21, %v7843_v25  ;;  %v2793_v29 = vrot.slane %v2776_v21, %v7846_v26  ;;  %v6637_v21 = vld [vmem:[%s8967_s9 + $0x50c] ss:$28 sps:$4 sm:$0xff]  }
 0x3c1   : > { %4667 = vmatprep.subr.bf16.mxu1 %v6517_v30  ;;  %4753 = vmatprep.subr.bf16.mxu0 %v6520_v31 }
 0x3c4   : > { %4668 = vmatpush1.bf16.msra.mxu1 %v6515_v32  ;;  %4754 = vmatpush1.bf16.msra.mxu0 %v6518_v33 }
 0x3c5   : > { %4669 = vmatprep.subr.bf16.mxu1 %v6523_v34  ;;  %4755 = vmatprep.subr.bf16.mxu0 %v6526_v35 }
 0x3c8   : > { %4670 = vmatpush1.bf16.msra.mxu1 %v6521_v36  ;;  %4756 = vmatpush1.bf16.msra.mxu0 %v6524_v37 }
 0x3c9   : > { %4671 = vmatprep.subr.bf16.mxu1 %v6529_v38  ;;  %4757 = vmatprep.subr.bf16.mxu0 %v6532_v39 }
 0x3cc   : > { %4672 = vmatpush1.bf16.msra.mxu1 %v6527_v40  ;;  %4758 = vmatpush1.bf16.msra.mxu0 %v6530_v41 }
 0x3cd   : > { %4673 = vmatprep.subr.bf16.mxu1 %v6535_v42  ;;  %4759 = vmatprep.subr.bf16.mxu0 %v6538_v43 }
 0x3d0   : > { %4674 = vmatpush1.bf16.msra.mxu1 %v6533_v44  ;;  %4760 = vmatpush1.bf16.msra.mxu0 %v6536_v45 }
 0x3d1   : > { %4675 = vmatprep.subr.bf16.mxu1 %v6541_v46  ;;  %4761 = vmatprep.subr.bf16.mxu0 %v6544_v47 }
 0x3d4   : > { %4676 = vmatpush1.bf16.msra.mxu1 %v6539_v48  ;;  %4762 = vmatpush1.bf16.msra.mxu0 %v6542_v49 }
 0x3d5   : > { %4677 = vmatprep.subr.bf16.mxu1 %v6547_v50  ;;  %4763 = vmatprep.subr.bf16.mxu0 %v6550_v51 }
 0x3d8   : > { %4678 = vmatpush1.bf16.msra.mxu1 %v6545_v52  ;;  %4764 = vmatpush1.bf16.msra.mxu0 %v6548_v53 }
 0x3d9   : > { %4679 = vmatprep.subr.bf16.mxu1 %v6553_v54  ;;  %4765 = vmatprep.subr.bf16.mxu0 %v6556_v55 }
 0x3dc   : > { %4680 = vmatpush1.bf16.msra.mxu1 %v6551_v56  ;;  %4766 = vmatpush1.bf16.msra.mxu0 %v6554_v57 }
 0x3dd   : > { %4681 = vmatprep.subr.bf16.mxu1 %v6559_v58  ;;  %4767 = vmatprep.subr.bf16.mxu0 %v6562_v59  ;;  %v6593_v58 = vld [vmem:[%s8967_s9 + $0x380] ss:$28 sps:$4 sm:$0xff]   ;;  %v6596_v59 = vld [vmem:[%s8967_s9 + $0x388] ss:$28 sps:$4 sm:$0xff]  }
 0x3e0   : > { %4682 = vmatpush1.bf16.msra.mxu1 %v6557_v60  ;;  %4768 = vmatpush1.bf16.msra.mxu0 %v6560_v61  ;;  %v6601_v60 = vld [vmem:[%s8967_s9 + $0x3bc] ss:$28 sps:$4 sm:$0xff]   ;;  %v6604_v61 = vld [vmem:[%s8967_s9 + $0x3c4] ss:$28 sps:$4 sm:$0xff]  }
 0x3e1   : > { %4683 = vmatprep.subr.bf16.mxu1 %v6565_v62  ;;  %4769 = vmatprep.subr.bf16.mxu0 %v6568_v63  ;;  %v6599_v62 = vld [vmem:[%s8967_s9 + $0x3b8] ss:$28 sps:$4 sm:$0xff]   ;;  %v6602_v63 = vld [vmem:[%s8967_s9 + $0x3c0] ss:$28 sps:$4 sm:$0xff]  }
 0x3e4   : > { %4684 = vmatpush1.bf16.msra.mxu1 %v6563_v0  ;;  %4770 = vmatpush1.bf16.msra.mxu0 %v6566_v1  ;;  %v6607_v0 = vld [vmem:[%s8967_s9 + $0x3f4] ss:$28 sps:$4 sm:$0xff]   ;;  %v6610_v1 = vld [vmem:[%s8967_s9 + $0x3fc] ss:$28 sps:$4 sm:$0xff]  }
 0x3e5   : > { %4685 = vmatprep.subr.bf16.mxu1 %v6571_v2  ;;  %4771 = vmatprep.subr.bf16.mxu0 %v6574_v3  ;;  %v6605_v2 = vld [vmem:[%s8967_s9 + $0x3f0] ss:$28 sps:$4 sm:$0xff]   ;;  %v6608_v3 = vld [vmem:[%s8967_s9 + $0x3f8] ss:$28 sps:$4 sm:$0xff]  }
 0x3e8   : > { %4686 = vmatpush1.bf16.msra.mxu1 %v6569_v4  ;;  %4772 = vmatpush1.bf16.msra.mxu0 %v6572_v5  ;;  %v6613_v4 = vld [vmem:[%s8967_s9 + $0x42c] ss:$28 sps:$4 sm:$0xff]   ;;  %v6616_v5 = vld [vmem:[%s8967_s9 + $0x434] ss:$28 sps:$4 sm:$0xff]  }
 0x3e9   : > { %4687 = vmatprep.subr.bf16.mxu1 %v6577_v6  ;;  %4773 = vmatprep.subr.bf16.mxu0 %v6580_v7  ;;  %v6611_v6 = vld [vmem:[%s8967_s9 + $0x428] ss:$28 sps:$4 sm:$0xff]   ;;  %v6614_v7 = vld [vmem:[%s8967_s9 + $0x430] ss:$28 sps:$4 sm:$0xff]  }
 0x3ec   : > { %4688 = vmatpush1.bf16.msra.mxu1 %v6575_v8  ;;  %4774 = vmatpush1.bf16.msra.mxu0 %v6578_v9  ;;  %v6619_v8 = vld [vmem:[%s8967_s9 + $0x464] ss:$28 sps:$4 sm:$0xff]   ;;  %v6622_v9 = vld [vmem:[%s8967_s9 + $0x46c] ss:$28 sps:$4 sm:$0xff]  }
 0x3ed   : > { %4689 = vmatprep.subr.bf16.mxu1 %v6583_v10  ;;  %4775 = vmatprep.subr.bf16.mxu0 %v6586_v11  ;;  %v6617_v10 = vld [vmem:[%s8967_s9 + $0x460] ss:$28 sps:$4 sm:$0xff]   ;;  %v6620_v11 = vld [vmem:[%s8967_s9 + $0x468] ss:$28 sps:$4 sm:$0xff]  }
 0x3f0   : > { %4690 = vmatpush1.bf16.msra.mxu1 %v6581_v12  ;;  %4776 = vmatpush1.bf16.msra.mxu0 %v6584_v13  ;;  %v6625_v12 = vld [vmem:[%s8967_s9 + $0x49c] ss:$28 sps:$4 sm:$0xff]   ;;  %v6628_v13 = vld [vmem:[%s8967_s9 + $0x4a4] ss:$28 sps:$4 sm:$0xff]  }
 0x3f1   : > { %4691 = vmatprep.subr.bf16.mxu1 %v6589_v14  ;;  %4777 = vmatprep.subr.bf16.mxu0 %v6592_v15  ;;  %v6623_v14 = vld [vmem:[%s8967_s9 + $0x498] ss:$28 sps:$4 sm:$0xff]   ;;  %v6626_v15 = vld [vmem:[%s8967_s9 + $0x4a0] ss:$28 sps:$4 sm:$0xff]  }
 0x3f4   : > { %4692 = vmatpush1.bf16.msra.mxu1 %v6587_v16  ;;  %4778 = vmatpush1.bf16.msra.mxu0 %v6590_v17  ;;  %v6631_v16 = vld [vmem:[%s8967_s9 + $0x4d4] ss:$28 sps:$4 sm:$0xff]   ;;  %v6634_v17 = vld [vmem:[%s8967_s9 + $0x4dc] ss:$28 sps:$4 sm:$0xff]  }
 0x3f5   : > { %4704 = vmatprep.subr.bf16.mxu1 %v6595_v18  ;;  %4790 = vmatprep.subr.bf16.mxu0 %v6598_v20  ;;  %v6629_v18 = vld [vmem:[%s8967_s9 + $0x4d0] ss:$28 sps:$4 sm:$0xff]   ;;  %v6632_v20 = vld [vmem:[%s8967_s9 + $0x4d8] ss:$28 sps:$4 sm:$0xff]  }
 0x48a   : > { %v3152_v30 = vpop.f32.mrb[8].mxu1  ;;  %v3195_v31 = vpop.f32.mrb[8].mxu0 }
 0x48b   : > { %v3153_v32 = vadd.f32 %v3152_v30, %v2781_v24  ;;  %v3196_v33 = vadd.f32 %v3195_v31, %v2789_v27  ;;  %v3154_v34 = vpop.f32.mrb[9].mxu1  ;;  %v3197_v35 = vpop.f32.mrb[9].mxu0  ;;  %v6646_v30 = vld [vmem:[%s8967_s9 + $0x54c] ss:$28 sps:$4 sm:$0xff]   ;;  %v6641_v31 = vld [vmem:[%s8967_s9 + $0x540] ss:$28 sps:$4 sm:$0xff]  }
 0x48c   : > { %v3155_v36 = vadd.f32 %v3154_v34, %v2785_v28  ;;  %v3198_v37 = vadd.f32 %v3197_v35, %v2793_v29  ;;  %v3156_v38 = vpop.f32.mrb[10].mxu1  ;;  %v3199_v39 = vpop.f32.mrb[10].mxu0  ;;  %v6652_v34 = vld [vmem:[%s8967_s9 + $0x584] ss:$28 sps:$4 sm:$0xff]   ;;  %v6647_v35 = vld [vmem:[%s8967_s9 + $0x578] ss:$28 sps:$4 sm:$0xff]  }
 0x48d   : > { %v3157_v40 = vadd.f32 %v3156_v38, %v2781_v24  ;;  %v3200_v41 = vadd.f32 %v3199_v39, %v2789_v27  ;;  %v3158_v42 = vpop.f32.mrb[11].mxu1  ;;  %v3201_v43 = vpop.f32.mrb[11].mxu0  ;;  %v3204_v46 = vmax.f32 %v3153_v32, 0.0  ;;  %v3206_v47 = vmax.f32 %v3196_v33, 0.0  ;;  %v6640_v24 = vld [vmem:[%s8967_s9 + $0x514] ss:$28 sps:$4 sm:$0xff]  }
 0x48e   : > { %v3159_v44 = vadd.f32 %v3158_v42, %v2785_v28  ;;  %v3202_v45 = vadd.f32 %v3201_v43, %v2793_v29  ;;  %v3205_v50 = vmax.f32 %v3155_v36, 0.0  ;;  %v3207_v51 = vmax.f32 %v3198_v37, 0.0  ;;  %v6635_v27 = vld [vmem:[%s8967_s9 + $0x508] ss:$28 sps:$4 sm:$0xff]   ;;  %v6638_v28 = vld [vmem:[%s8967_s9 + $0x510] ss:$28 sps:$4 sm:$0xff]  }
 0x48f   : > { %v3208_v48 = vmax.f32 %v3157_v40, 0.0  ;;  %v3210_v49 = vmax.f32 %v3200_v41, 0.0  ;;  %v6643_v29 = vld [vmem:[%s8967_s9 + $0x544] ss:$28 sps:$4 sm:$0xff]   ;;  %v6649_v33 = vld [vmem:[%s8967_s9 + $0x57c] ss:$28 sps:$4 sm:$0xff]  }
 0x490   : > { %v3209_v52 = vmax.f32 %v3159_v44, 0.0  ;;  %v3211_v53 = vmax.f32 %v3202_v45, 0.0  ;;  %v6644_v32 = vld [vmem:[%s8967_s9 + $0x548] ss:$28 sps:$4 sm:$0xff]   ;;  %v6650_v36 = vld [vmem:[%s8967_s9 + $0x580] ss:$28 sps:$4 sm:$0xff]  }
 0x491   : > { %v8376_v54 = vpack.c.bf16 %v3208_v48, %v3204_v46  ;;  %v8378_v55 = vpack.c.bf16 %v3210_v49, %v3206_v47  ;;  %v6655_v37 = vld [vmem:[%s8967_s9 + $0x5b4] ss:$28 sps:$4 sm:$0xff]   ;;  %v6658_v38 = vld [vmem:[%s8967_s9 + $0x5bc] ss:$28 sps:$4 sm:$0xff]   ;;  %v6661_v41 = vld [vmem:[%s8967_s9 + $0x5ec] ss:$28 sps:$4 sm:$0xff]  }
 0x492   : > { %v8380_v56 = vpack.c.bf16 %v3209_v52, %v3205_v50  ;;  %v8382_v57 = vpack.c.bf16 %v3211_v53, %v3207_v51  ;;  %v6653_v39 = vld [vmem:[%s8967_s9 + $0x5b0] ss:$28 sps:$4 sm:$0xff]   ;;  %v6656_v40 = vld [vmem:[%s8967_s9 + $0x5b8] ss:$28 sps:$4 sm:$0xff]   ;;  %v6659_v43 = vld [vmem:[%s8967_s9 + $0x5e8] ss:$28 sps:$4 sm:$0xff]  }
 0x493   : > { %v6664_v42 = vld [vmem:[%s8967_s9 + $0x5f4] ss:$28 sps:$4 sm:$0xff]   ;;  %v6667_v45 = vld [vmem:[%s8967_s9 + $0x624] ss:$28 sps:$4 sm:$0xff]   ;;  %v6670_v46 = vld [vmem:[%s8967_s9 + $0x62c] ss:$28 sps:$4 sm:$0xff]  }
 0x494   : > { %4693 = vmatprep.mubr.bf16.mxu1 %v8380_v56  ;;  %4779 = vmatprep.mubr.bf16.mxu0 %v8380_v56  ;;  %v6662_v44 = vld [vmem:[%s8967_s9 + $0x5f0] ss:$28 sps:$4 sm:$0xff]   ;;  %v6665_v47 = vld [vmem:[%s8967_s9 + $0x620] ss:$28 sps:$4 sm:$0xff]   ;;  %v6668_v48 = vld [vmem:[%s8967_s9 + $0x628] ss:$28 sps:$4 sm:$0xff]  }
 0x495   : > { %4694 = vmatmul.mubr.bf16.vlgmr.msra.gmra.mrb[12].mxu1 %v8376_v54  ;;  %4780 = vmatmul.mubr.bf16.vlgmr.msra.gmra.mrb[12].mxu0 %v8376_v54  ;;  %v6673_v49 = vld [vmem:[%s8967_s9 + $0x65c] ss:$28 sps:$4 sm:$0xff]   ;;  %v6676_v50 = vld [vmem:[%s8967_s9 + $0x664] ss:$28 sps:$4 sm:$0xff]   ;;  %v6679_v53 = vld [vmem:[%s8967_s9 + $0x694] ss:$28 sps:$4 sm:$0xff]  }
 0x496   : > { %4705 = vmatpush1.bf16.msra.mxu1 %v6593_v58  ;;  %4791 = vmatpush1.bf16.msra.mxu0 %v6596_v59  ;;  %v6671_v51 = vld [vmem:[%s8967_s9 + $0x658] ss:$28 sps:$4 sm:$0xff]   ;;  %v6674_v52 = vld [vmem:[%s8967_s9 + $0x660] ss:$28 sps:$4 sm:$0xff]   ;;  %v6677_v59 = vld [vmem:[%s8967_s9 + $0x690] ss:$28 sps:$4 sm:$0xff]  }
 0x497   : > { %4736 = vmatprep.mubr.bf16.mxu1 %v8382_v57  ;;  %4822 = vmatprep.mubr.bf16.mxu0 %v8382_v57  ;;  %v6682_v58 = vld [vmem:[%s8967_s9 + $0x69c] ss:$28 sps:$4 sm:$0xff]  }
 0x498   : > { %4706 = vmatprep.subr.bf16.mxu1 %v6601_v60  ;;  %4792 = vmatprep.subr.bf16.mxu0 %v6604_v61  ;;  %v6680_v60 = vld [vmem:[%s8967_s9 + $0x698] ss:$28 sps:$4 sm:$0xff]   ;;  %v6685_v61 = vld [vmem:[%s8967_s9 + $0x6cc] ss:$28 sps:$4 sm:$0xff]  }
 0x49a   : > { %4707 = vmatpush1.bf16.msra.mxu1 %v6599_v62  ;;  %4793 = vmatpush1.bf16.msra.mxu0 %v6602_v63  ;;  %v6688_v62 = vld [vmem:[%s8967_s9 + $0x6d4] ss:$28 sps:$4 sm:$0xff]   ;;  %v6683_v63 = vld [vmem:[%s8967_s9 + $0x6c8] ss:$28 sps:$4 sm:$0xff]  }
 0x49b   : > { %4708 = vmatprep.subr.bf16.mxu1 %v6607_v0  ;;  %4794 = vmatprep.subr.bf16.mxu0 %v6610_v1  ;;  %v6686_v0 = vld [vmem:[%s8967_s9 + $0x6d0] ss:$28 sps:$4 sm:$0xff]  }
 0x49c   : > { %v6691_v1 = vld [vmem:[%s8967_s9 + $0x14] ss:$28 sps:$4 sm:$0xff]  }
 0x49e   : > { %4709 = vmatpush1.bf16.msra.mxu1 %v6605_v2  ;;  %4795 = vmatpush1.bf16.msra.mxu0 %v6608_v3  ;;  %v6692_v2 = vld [vmem:[%s8967_s9 + $0x1d8] ss:$28 sps:$4 sm:$0xff]   ;;  %v6689_v3 = vld [vmem:[%s8967_s9 + $0x10] ss:$28 sps:$4 sm:$0xff]  }
 0x49f   : > { %4710 = vmatprep.subr.bf16.mxu1 %v6613_v4  ;;  %4796 = vmatprep.subr.bf16.mxu0 %v6616_v5  ;;  %v6693_v4 = vld [vmem:[%s8967_s9 + $0x18] ss:$28 sps:$4 sm:$0xff]   ;;  %v6696_v5 = vld [vmem:[%s8967_s9 + $0x4c] ss:$28 sps:$4 sm:$0xff]  }
 0x4a2   : > { %4711 = vmatpush1.bf16.msra.mxu1 %v6611_v6  ;;  %4797 = vmatpush1.bf16.msra.mxu0 %v6614_v7  ;;  %v6697_v6 = vld [vmem:[%s8967_s9 + $0x210] ss:$28 sps:$4 sm:$0xff]   ;;  %v6694_v7 = vld [vmem:[%s8967_s9 + $0x48] ss:$28 sps:$4 sm:$0xff]  }
 0x4a3   : > { %4712 = vmatprep.subr.bf16.mxu1 %v6619_v8  ;;  %4798 = vmatprep.subr.bf16.mxu0 %v6622_v9  ;;  %v6698_v8 = vld [vmem:[%s8967_s9 + $0x50] ss:$28 sps:$4 sm:$0xff]   ;;  %v6701_v9 = vld [vmem:[%s8967_s9 + $0x84] ss:$28 sps:$4 sm:$0xff]  }
 0x4a6   : > { %4713 = vmatpush1.bf16.msra.mxu1 %v6617_v10  ;;  %4799 = vmatpush1.bf16.msra.mxu0 %v6620_v11  ;;  %v6702_v10 = vld [vmem:[%s8967_s9 + $0x248] ss:$28 sps:$4 sm:$0xff]   ;;  %v6699_v11 = vld [vmem:[%s8967_s9 + $0x80] ss:$28 sps:$4 sm:$0xff]  }
 0x4a7   : > { %4714 = vmatprep.subr.bf16.mxu1 %v6625_v12  ;;  %4800 = vmatprep.subr.bf16.mxu0 %v6628_v13  ;;  %v6706_v12 = vld [vmem:[%s8967_s9 + $0xbc] ss:$28 sps:$4 sm:$0xff]  }
 0x4a8   : > { %v6707_v13 = vld [vmem:[%s8967_s9 + $0x280] ss:$28 sps:$4 sm:$0xff]  }
 0x4aa   : > { %4715 = vmatpush1.bf16.msra.mxu1 %v6623_v14  ;;  %4801 = vmatpush1.bf16.msra.mxu0 %v6626_v15  ;;  %v6704_v14 = vld [vmem:[%s8967_s9 + $0xb8] ss:$28 sps:$4 sm:$0xff]   ;;  %v6708_v15 = vld [vmem:[%s8967_s9 + $0xc0] ss:$28 sps:$4 sm:$0xff]  }
 0x4ab   : > { %4716 = vmatprep.subr.bf16.mxu1 %v6631_v16  ;;  %4802 = vmatprep.subr.bf16.mxu0 %v6634_v17  ;;  %v6711_v16 = vld [vmem:[%s8967_s9 + $0xf4] ss:$28 sps:$4 sm:$0xff]  }
 0x4ac   : > { %v6712_v17 = vld [vmem:[%s8967_s9 + $0x2b8] ss:$28 sps:$4 sm:$0xff]  }
 0x4ae   : > { %4717 = vmatpush1.bf16.msra.mxu1 %v6629_v18  ;;  %4803 = vmatpush1.bf16.msra.mxu0 %v6632_v20  ;;  %v6709_v18 = vld [vmem:[%s8967_s9 + $0xf0] ss:$28 sps:$4 sm:$0xff]   ;;  %v6713_v20 = vld [vmem:[%s8967_s9 + $0xf8] ss:$28 sps:$4 sm:$0xff]  }
 0x4af   : > { %4718 = vmatprep.subr.bf16.mxu1 %v6637_v21  ;;  %4804 = vmatprep.subr.bf16.mxu0 %v6640_v24  ;;  %v6716_v21 = vld [vmem:[%s8967_s9 + $0x12c] ss:$28 sps:$4 sm:$0xff]  }
 0x4b0   : > { %v6717_v24 = vld [vmem:[%s8967_s9 + $0x2f0] ss:$28 sps:$4 sm:$0xff]  }
 0x4b2   : > { %4719 = vmatpush1.bf16.msra.mxu1 %v6635_v27  ;;  %4805 = vmatpush1.bf16.msra.mxu0 %v6638_v28  ;;  %v6714_v27 = vld [vmem:[%s8967_s9 + $0x128] ss:$28 sps:$4 sm:$0xff]   ;;  %v6718_v28 = vld [vmem:[%s8967_s9 + $0x130] ss:$28 sps:$4 sm:$0xff]  }
 0x4b3   : > { %4720 = vmatprep.subr.bf16.mxu1 %v6643_v29  ;;  %4806 = vmatprep.subr.bf16.mxu0 %v6646_v30  ;;  %v6721_v29 = vld [vmem:[%s8967_s9 + $0x164] ss:$28 sps:$4 sm:$0xff]  }
 0x4b4   : > { %v6722_v30 = vld [vmem:[%s8967_s9 + $0x328] ss:$28 sps:$4 sm:$0xff]  }
 0x4b6   : > { %4721 = vmatpush1.bf16.msra.mxu1 %v6641_v31  ;;  %4807 = vmatpush1.bf16.msra.mxu0 %v6644_v32  ;;  %v6719_v31 = vld [vmem:[%s8967_s9 + $0x160] ss:$28 sps:$4 sm:$0xff]   ;;  %v6723_v32 = vld [vmem:[%s8967_s9 + $0x168] ss:$28 sps:$4 sm:$0xff]  }
 0x4b7   : > { %4722 = vmatprep.subr.bf16.mxu1 %v6649_v33  ;;  %4808 = vmatprep.subr.bf16.mxu0 %v6652_v34  ;;  %v6726_v33 = vld [vmem:[%s8967_s9 + $0x19c] ss:$28 sps:$4 sm:$0xff]  }
 0x4b8   : > { %v6727_v34 = vld [vmem:[%s8967_s9 + $0x360] ss:$28 sps:$4 sm:$0xff]  }
 0x4ba   : > { %4723 = vmatpush1.bf16.msra.mxu1 %v6647_v35  ;;  %4809 = vmatpush1.bf16.msra.mxu0 %v6650_v36  ;;  %v6724_v35 = vld [vmem:[%s8967_s9 + $0x198] ss:$28 sps:$4 sm:$0xff]   ;;  %v6728_v36 = vld [vmem:[%s8967_s9 + $0x1a0] ss:$28 sps:$4 sm:$0xff]  }
 0x4bb   : > { %4724 = vmatprep.subr.bf16.mxu1 %v6655_v37  ;;  %4810 = vmatprep.subr.bf16.mxu0 %v6658_v38  ;;  %v6731_v37 = vld [vmem:[%s8967_s9 + $0x1d4] ss:$28 sps:$4 sm:$0xff]  }
 0x4bc   : > { %v6732_v38 = vld [vmem:[%s8967_s9 + $0x558] ss:$28 sps:$4 sm:$0xff]  }
 0x4be   : > { %4725 = vmatpush1.bf16.msra.mxu1 %v6653_v39  ;;  %4811 = vmatpush1.bf16.msra.mxu0 %v6656_v40  ;;  %v6729_v39 = vld [vmem:[%s8967_s9 + $0x1d0] ss:$28 sps:$4 sm:$0xff]   ;;  %v6733_v40 = vld [vmem:[%s8967_s9 + $0x398] ss:$28 sps:$4 sm:$0xff]  }
 0x4bf   : > { %4726 = vmatprep.subr.bf16.mxu1 %v6661_v41  ;;  %4812 = vmatprep.subr.bf16.mxu0 %v6664_v42  ;;  %v6736_v41 = vld [vmem:[%s8967_s9 + $0x20c] ss:$28 sps:$4 sm:$0xff]  }
 0x4c0   : > { %v6737_v42 = vld [vmem:[%s8967_s9 + $0x590] ss:$28 sps:$4 sm:$0xff]  }
 0x4c2   : > { %4727 = vmatpush1.bf16.msra.mxu1 %v6659_v43  ;;  %4813 = vmatpush1.bf16.msra.mxu0 %v6662_v44  ;;  %v6734_v43 = vld [vmem:[%s8967_s9 + $0x208] ss:$28 sps:$4 sm:$0xff]   ;;  %v6738_v44 = vld [vmem:[%s8967_s9 + $0x3d0] ss:$28 sps:$4 sm:$0xff]  }
 0x4c3   : > { %4728 = vmatprep.subr.bf16.mxu1 %v6667_v45  ;;  %4814 = vmatprep.subr.bf16.mxu0 %v6670_v46  ;;  %v6741_v45 = vld [vmem:[%s8967_s9 + $0x244] ss:$28 sps:$4 sm:$0xff]  }
 0x4c4   : > { %v6742_v46 = vld [vmem:[%s8967_s9 + $0x5c8] ss:$28 sps:$4 sm:$0xff]  }
 0x4c6   : > { %4729 = vmatpush1.bf16.msra.mxu1 %v6665_v47  ;;  %4815 = vmatpush1.bf16.msra.mxu0 %v6668_v48  ;;  %v6739_v47 = vld [vmem:[%s8967_s9 + $0x240] ss:$28 sps:$4 sm:$0xff]   ;;  %v6743_v48 = vld [vmem:[%s8967_s9 + $0x408] ss:$28 sps:$4 sm:$0xff]  }
 0x4c7   : > { %4730 = vmatprep.subr.bf16.mxu1 %v6673_v49  ;;  %4816 = vmatprep.subr.bf16.mxu0 %v6676_v50  ;;  %v6746_v49 = vld [vmem:[%s8967_s9 + $0x27c] ss:$28 sps:$4 sm:$0xff]  }
 0x4c8   : > { %v6747_v50 = vld [vmem:[%s8967_s9 + $0x600] ss:$28 sps:$4 sm:$0xff]  }
 0x4ca   : > { %4731 = vmatpush1.bf16.msra.mxu1 %v6671_v51  ;;  %4817 = vmatpush1.bf16.msra.mxu0 %v6674_v52  ;;  %v6744_v51 = vld [vmem:[%s8967_s9 + $0x278] ss:$28 sps:$4 sm:$0xff]   ;;  %v6748_v52 = vld [vmem:[%s8967_s9 + $0x440] ss:$28 sps:$4 sm:$0xff]  }
 0x4cb   : > { %4732 = vmatprep.subr.bf16.mxu1 %v6679_v53  ;;  %4818 = vmatprep.subr.bf16.mxu0 %v6682_v58  ;;  %v6751_v53 = vld [vmem:[%s8967_s9 + $0x2b4] ss:$28 sps:$4 sm:$0xff]  }
 0x4cc   : > { %v6752_v58 = vld [vmem:[%s8967_s9 + $0x638] ss:$28 sps:$4 sm:$0xff]  }
 0x4ce   : > { %4733 = vmatpush1.bf16.msra.mxu1 %v6677_v59  ;;  %4819 = vmatpush1.bf16.msra.mxu0 %v6680_v60  ;;  %v6749_v59 = vld [vmem:[%s8967_s9 + $0x2b0] ss:$28 sps:$4 sm:$0xff]   ;;  %v6753_v60 = vld [vmem:[%s8967_s9 + $0x478] ss:$28 sps:$4 sm:$0xff]  }
 0x4cf   : > { %4734 = vmatprep.subr.bf16.mxu1 %v6685_v61  ;;  %4820 = vmatprep.subr.bf16.mxu0 %v6688_v62  ;;  %v6756_v61 = vld [vmem:[%s8967_s9 + $0x2ec] ss:$28 sps:$4 sm:$0xff]  }
 0x4d0   : > { %v6757_v62 = vld [vmem:[%s8967_s9 + $0x670] ss:$28 sps:$4 sm:$0xff]  }
 0x4d2   : > { %4735 = vmatpush1.bf16.msra.mxu1 %v6683_v63  ;;  %4821 = vmatpush1.bf16.msra.mxu0 %v6686_v0  ;;  %v6754_v63 = vld [vmem:[%s8967_s9 + $0x2e8] ss:$28 sps:$4 sm:$0xff]   ;;  %v6758_v0 = vld [vmem:[%s8967_s9 + $0x4b0] ss:$28 sps:$4 sm:$0xff]  }
 0x4d3   : > { %4833 = vmatprep.subr.bf16.mxu1 %v6691_v1  ;;  %5810 = vmatprep.subr.bf16.mxu0 %v6692_v2  ;;  %v6761_v1 = vld [vmem:[%s8967_s9 + $0x324] ss:$28 sps:$4 sm:$0xff]  }
 0x4d4   : > { %v6762_v2 = vld [vmem:[%s8967_s9 + $0x6a8] ss:$28 sps:$4 sm:$0xff]  }
 0x4d5   : > { %4737 = vmatmul.mubr.bf16.vlgmr.msra.gmra.mrb[12].mxu1 %v8378_v55  ;;  %4823 = vmatmul.mubr.bf16.vlgmr.msra.gmra.mrb[12].mxu0 %v8378_v55 }
 0x4d6   : > { %4834 = vmatpush1.bf16.msra.mxu1 %v6689_v3  ;;  %4865 = vmatprep.mubr.bf16.mxu1 %v8380_v56  ;;  %v6759_v3 = vld [vmem:[%s8967_s9 + $0x320] ss:$28 sps:$4 sm:$0xff]  }
 0x4d7   : > { %5811 = vmatpush3.bf16.msra.mxu0 %v6693_v4  ;;  %4951 = vmatprep.mubr.bf16.mxu0 %v8380_v56  ;;  %v6703_v56 = vld [vmem:[%s8967_s9 + $0x88] ss:$28 sps:$4 sm:$0xff]  }
 0x4d8   : > { %4835 = vmatprep.subr.bf16.mxu1 %v6696_v5  ;;  %5812 = vmatprep.subr.bf16.mxu0 %v6697_v6  ;;  %v6763_v4 = vld [vmem:[%s8967_s9 + $0x4e8] ss:$28 sps:$4 sm:$0xff]   ;;  %v6766_v5 = vld [vmem:[%s8967_s9 + $0x35c] ss:$28 sps:$4 sm:$0xff]  }
 0x4d9   : > { %v6767_v6 = vld [vmem:[%s8967_s9 + $0x6e0] ss:$28 sps:$4 sm:$0xff]  }
 0x4da   : > { %4836 = vmatpush1.bf16.msra.mxu1 %v6694_v7  ;;  %v6764_v7 = vld [vmem:[%s8967_s9 + $0x358] ss:$28 sps:$4 sm:$0xff]  }
 0x4db   : > { %5813 = vmatpush3.bf16.msra.mxu0 %v6698_v8  ;;  %4837 = vmatprep.subr.bf16.mxu1 %v6701_v9  ;;  %v6768_v8 = vld [vmem:[%s8967_s9 + $0x520] ss:$28 sps:$4 sm:$0xff]   ;;  %v6771_v9 = vld [vmem:[%s8967_s9 + $0x394] ss:$28 sps:$4 sm:$0xff]  }
 0x4dc   : > { %5814 = vmatprep.subr.bf16.mxu0 %v6702_v10  ;;  %v6769_v10 = vld [vmem:[%s8967_s9 + $0x390] ss:$28 sps:$4 sm:$0xff]  }
 0x4de   : > { %4838 = vmatpush1.bf16.msra.mxu1 %v6699_v11  ;;  %v6774_v11 = vld [vmem:[%s8967_s9 + $0x3cc] ss:$28 sps:$4 sm:$0xff]  }
 0x4df   : > { %5815 = vmatpush3.bf16.msra.mxu0 %v6703_v56  ;;  %4839 = vmatprep.subr.bf16.mxu1 %v6706_v12  ;;  %v6772_v56 = vld [vmem:[%s8967_s9 + $0x3c8] ss:$28 sps:$4 sm:$0xff]  }
 0x4e0   : > { %5816 = vmatprep.subr.bf16.mxu0 %v6707_v13  ;;  %v6777_v12 = vld [vmem:[%s8967_s9 + $0x404] ss:$28 sps:$4 sm:$0xff]  }
 0x4e1   : > { %v6775_v13 = vld [vmem:[%s8967_s9 + $0x400] ss:$28 sps:$4 sm:$0xff]  }
 0x4e2   : > { %4840 = vmatpush1.bf16.msra.mxu1 %v6704_v14  ;;  %v6783_v14 = vld [vmem:[%s8967_s9 + $0x474] ss:$28 sps:$4 sm:$0xff]  }
 0x4e3   : > { %5817 = vmatpush3.bf16.msra.mxu0 %v6708_v15  ;;  %4841 = vmatprep.subr.bf16.mxu1 %v6711_v16  ;;  %v6781_v15 = vld [vmem:[%s8967_s9 + $0x470] ss:$28 sps:$4 sm:$0xff]  }
 0x4e4   : > { %5818 = vmatprep.subr.bf16.mxu0 %v6712_v17  ;;  %v6786_v16 = vld [vmem:[%s8967_s9 + $0x4ac] ss:$28 sps:$4 sm:$0xff]  }
 0x4e5   : > { %v6784_v17 = vld [vmem:[%s8967_s9 + $0x4a8] ss:$28 sps:$4 sm:$0xff]  }
 0x4e6   : > { %4842 = vmatpush1.bf16.msra.mxu1 %v6709_v18  ;;  %v6789_v18 = vld [vmem:[%s8967_s9 + $0x4e4] ss:$28 sps:$4 sm:$0xff]  }
 0x4e7   : > { %5819 = vmatpush3.bf16.msra.mxu0 %v6713_v20  ;;  %4843 = vmatprep.subr.bf16.mxu1 %v6716_v21  ;;  %v6787_v20 = vld [vmem:[%s8967_s9 + $0x4e0] ss:$28 sps:$4 sm:$0xff]  }
 0x4e8   : > { %5820 = vmatprep.subr.bf16.mxu0 %v6717_v24  ;;  %v6792_v21 = vld [vmem:[%s8967_s9 + $0x51c] ss:$28 sps:$4 sm:$0xff]  }
 0x4e9   : > { %v6790_v24 = vld [vmem:[%s8967_s9 + $0x518] ss:$28 sps:$4 sm:$0xff]  }
 0x4ea   : > { %4844 = vmatpush1.bf16.msra.mxu1 %v6714_v27  ;;  %v6795_v27 = vld [vmem:[%s8967_s9 + $0x554] ss:$28 sps:$4 sm:$0xff]  }
 0x4eb   : > { %5821 = vmatpush3.bf16.msra.mxu0 %v6718_v28  ;;  %4845 = vmatprep.subr.bf16.mxu1 %v6721_v29  ;;  %v6793_v28 = vld [vmem:[%s8967_s9 + $0x550] ss:$28 sps:$4 sm:$0xff]  }
 0x4ec   : > { %5822 = vmatprep.subr.bf16.mxu0 %v6722_v30  ;;  %v6798_v29 = vld [vmem:[%s8967_s9 + $0x58c] ss:$28 sps:$4 sm:$0xff]  }
 0x4ed   : > { %v6796_v30 = vld [vmem:[%s8967_s9 + $0x588] ss:$28 sps:$4 sm:$0xff]  }
 0x4ee   : > { %4846 = vmatpush1.bf16.msra.mxu1 %v6719_v31  ;;  %v6801_v31 = vld [vmem:[%s8967_s9 + $0x5c4] ss:$28 sps:$4 sm:$0xff]  }
 0x4ef   : > { %5823 = vmatpush3.bf16.msra.mxu0 %v6723_v32  ;;  %4847 = vmatprep.subr.bf16.mxu1 %v6726_v33  ;;  %v6799_v32 = vld [vmem:[%s8967_s9 + $0x5c0] ss:$28 sps:$4 sm:$0xff]  }
 0x4f0   : > { %5824 = vmatprep.subr.bf16.mxu0 %v6727_v34  ;;  %v6804_v33 = vld [vmem:[%s8967_s9 + $0x5fc] ss:$28 sps:$4 sm:$0xff]  }
 0x4f1   : > { %v6802_v34 = vld [vmem:[%s8967_s9 + $0x5f8] ss:$28 sps:$4 sm:$0xff]  }
 0x4f2   : > { %4848 = vmatpush1.bf16.msra.mxu1 %v6724_v35  ;;  %v6807_v35 = vld [vmem:[%s8967_s9 + $0x634] ss:$28 sps:$4 sm:$0xff]  }
 0x4f3   : > { %5825 = vmatpush3.bf16.msra.mxu0 %v6728_v36  ;;  %4849 = vmatprep.subr.bf16.mxu1 %v6731_v37  ;;  %v6805_v36 = vld [vmem:[%s8967_s9 + $0x630] ss:$28 sps:$4 sm:$0xff]  }
 0x4f4   : > { %5832 = vmatprep.subr.bf16.mxu0 %v6732_v38  ;;  %v6810_v37 = vld [vmem:[%s8967_s9 + $0x66c] ss:$28 sps:$4 sm:$0xff]  }
 0x4f5   : > { %v6808_v38 = vld [vmem:[%s8967_s9 + $0x668] ss:$28 sps:$4 sm:$0xff]  }
 0x4f6   : > { %4952 = vmatmul.mubr.bf16.vlgmr.msra.gmra.mrb[16].mxu0 %v8376_v54  ;;  %4850 = vmatpush1.bf16.msra.mxu1 %v6729_v39  ;;  %v6813_v39 = vld [vmem:[%s8967_s9 + $0x6a4] ss:$28 sps:$4 sm:$0xff]  }
 0x4f7   : > { %5833 = vmatpush3.bf16.msra.mxu0 %v6733_v40  ;;  %4992 = vmatprep.mubr.bf16.mxu0 %v8382_v57  ;;  %v6811_v40 = vld [vmem:[%s8967_s9 + $0x6a0] ss:$28 sps:$4 sm:$0xff]  }
 0x4f8   : > { %4851 = vmatprep.subr.bf16.mxu1 %v6736_v41  ;;  %5834 = vmatprep.subr.bf16.mxu0 %v6737_v42  ;;  %v6816_v41 = vld [vmem:[%s8967_s9 + $0x6dc] ss:$28 sps:$4 sm:$0xff]  }
 0x4f9   : > { %v6814_v42 = vld [vmem:[%s8967_s9 + $0x6d8] ss:$28 sps:$4 sm:$0xff]  }
 0x4fa   : > { %4852 = vmatpush1.bf16.msra.mxu1 %v6734_v43  ;;  %v8877_v43 = vld [vmem:[%s8968_s10] sm:$0x7f] }
 0x4fb   : > { %5835 = vmatpush3.bf16.msra.mxu0 %v6738_v44  ;;  %4853 = vmatprep.subr.bf16.mxu1 %v6741_v45  ;;  %v3477_v44 = vrot.slane %v8877_v43, %v7834_v22  ;;  %v3485_v45 = vrot.slane %v8877_v43, %v7837_v23 }
 0x4fc   : > { %5836 = vmatprep.subr.bf16.mxu0 %v6742_v46  ;;  %v3481_v46 = vrot.slane %v8877_v43, %v7843_v25 }
 0x4fe   : > { %4854 = vmatpush1.bf16.msra.mxu1 %v6739_v47  ;;  %v3489_v47 = vrot.slane %v8877_v43, %v7846_v26 }
 0x4ff   : > { %5837 = vmatpush3.bf16.msra.mxu0 %v6743_v48  ;;  %4855 = vmatprep.subr.bf16.mxu1 %v6746_v49 }
 0x500   : > { %5838 = vmatprep.subr.bf16.mxu0 %v6747_v50 }
 0x502   : > { %4856 = vmatpush1.bf16.msra.mxu1 %v6744_v51 }
 0x503   : > { %5839 = vmatpush3.bf16.msra.mxu0 %v6748_v52  ;;  %4857 = vmatprep.subr.bf16.mxu1 %v6751_v53 }
 0x504   : > { %5840 = vmatprep.subr.bf16.mxu0 %v6752_v58 }
 0x506   : > { %4858 = vmatpush1.bf16.msra.mxu1 %v6749_v59 }
 0x507   : > { %5841 = vmatpush3.bf16.msra.mxu0 %v6753_v60  ;;  %4859 = vmatprep.subr.bf16.mxu1 %v6756_v61 }
 0x508   : > { %5842 = vmatprep.subr.bf16.mxu0 %v6757_v62 }
 0x50a   : > { %4860 = vmatpush1.bf16.msra.mxu1 %v6754_v63 }
 0x50b   : > { %5843 = vmatpush3.bf16.msra.mxu0 %v6758_v0  ;;  %4861 = vmatprep.subr.bf16.mxu1 %v6761_v1 }
 0x50c   : > { %5844 = vmatprep.subr.bf16.mxu0 %v6762_v2 }
 0x50e   : > { %4862 = vmatpush1.bf16.msra.mxu1 %v6759_v3 }
 0x50f   : > { %5845 = vmatpush3.bf16.msra.mxu0 %v6763_v4  ;;  %4863 = vmatprep.subr.bf16.mxu1 %v6766_v5 }
 0x510   : > { %5846 = vmatprep.subr.bf16.mxu0 %v6767_v6 }
 0x512   : > { %4864 = vmatpush1.bf16.msra.mxu1 %v6764_v7 }
 0x513   : > { %5847 = vmatpush3.bf16.msra.mxu0 %v6768_v8  ;;  %4876 = vmatprep.subr.bf16.mxu1 %v6771_v9 }
 0x515   : > { %4866 = vmatmul.mubr.bf16.vlgmr.msra.gmra.mrb[16].mxu1 %v8376_v54  ;;  %v6780_v54 = vld [vmem:[%s8967_s9 + $0x43c] ss:$28 sps:$4 sm:$0xff]  }
 0x516   : > { %4993 = vmatmul.mubr.bf16.vlgmr.msra.gmra.mrb[20].mxu0 %v8378_v55  ;;  %4877 = vmatpush1.bf16.msra.mxu1 %v6769_v10 }
 0x517   : > { %4908 = vmatprep.mubr.bf16.mxu1 %v8382_v57  ;;  %4878 = vmatprep.subr.bf16.mxu1 %v6774_v11  ;;  %v6778_v57 = vld [vmem:[%s8967_s9 + $0x438] ss:$28 sps:$4 sm:$0xff]  }
 0x51a   : > { %4879 = vmatpush1.bf16.msra.mxu1 %v6772_v56 }
 0x51b   : > { %4880 = vmatprep.subr.bf16.mxu1 %v6777_v12 }
 0x51e   : > { %4881 = vmatpush1.bf16.msra.mxu1 %v6775_v13 }
 0x51f   : > { %4882 = vmatprep.subr.bf16.mxu1 %v6780_v54 }
 0x522   : > { %4883 = vmatpush1.bf16.msra.mxu1 %v6778_v57 }
 0x523   : > { %4884 = vmatprep.subr.bf16.mxu1 %v6783_v14 }
 0x526   : > { %4885 = vmatpush1.bf16.msra.mxu1 %v6781_v15 }
 0x527   : > { %4886 = vmatprep.subr.bf16.mxu1 %v6786_v16 }
 0x52a   : > { %4887 = vmatpush1.bf16.msra.mxu1 %v6784_v17 }
 0x52b   : > { %4888 = vmatprep.subr.bf16.mxu1 %v6789_v18 }
 0x52e   : > { %4889 = vmatpush1.bf16.msra.mxu1 %v6787_v20 }
 0x52f   : > { %4890 = vmatprep.subr.bf16.mxu1 %v6792_v21 }
 0x532   : > { %4891 = vmatpush1.bf16.msra.mxu1 %v6790_v24 }
 0x533   : > { %4892 = vmatprep.subr.bf16.mxu1 %v6795_v27 }
 0x536   : > { %4893 = vmatpush1.bf16.msra.mxu1 %v6793_v28 }
 0x537   : > { %4894 = vmatprep.subr.bf16.mxu1 %v6798_v29 }
 0x53a   : > { %4895 = vmatpush1.bf16.msra.mxu1 %v6796_v30 }
 0x53b   : > { %4896 = vmatprep.subr.bf16.mxu1 %v6801_v31 }
 0x53e   : > { %4897 = vmatpush1.bf16.msra.mxu1 %v6799_v32 }
 0x53f   : > { %4898 = vmatprep.subr.bf16.mxu1 %v6804_v33 }
 0x542   : > { %4899 = vmatpush1.bf16.msra.mxu1 %v6802_v34 }
 0x543   : > { %4900 = vmatprep.subr.bf16.mxu1 %v6807_v35 }
 0x546   : > { %4901 = vmatpush1.bf16.msra.mxu1 %v6805_v36 }
 0x547   : > { %4902 = vmatprep.subr.bf16.mxu1 %v6810_v37 }
 0x54a   : > { %4903 = vmatpush1.bf16.msra.mxu1 %v6808_v38 }
 0x54b   : > { %4904 = vmatprep.subr.bf16.mxu1 %v6813_v39 }
 0x54e   : > { %4905 = vmatpush1.bf16.msra.mxu1 %v6811_v40 }
 0x54f   : > { %4906 = vmatprep.subr.bf16.mxu1 %v6816_v41 }
 0x552   : > { %4907 = vmatpush1.bf16.msra.mxu1 %v6814_v42 }
 0x555   : > { %4909 = vmatmul.mubr.bf16.vlgmr.msra.gmra.mrb[16].mxu1 %v8378_v55 }
 0x5a8   : > { %v4738_v48 = vpop.f32.mrb[12].mxu1  ;;  %v4824_v49 = vpop.f32.mrb[12].mxu0 }
 0x5a9   : > { %v5866_v55 = vadd.f32 %v4738_v48, %v3477_v44  ;;  %v5870_v50 = vadd.f32 %v4824_v49, %v3485_v45  ;;  %v4740_v51 = vpop.f32.mrb[13].mxu1  ;;  %v4826_v52 = vpop.f32.mrb[13].mxu0 }
 0x5aa   : > { %v5867_v53 = vadd.f32 %v4740_v51, %v3481_v46  ;;  %v5871_v58 = vadd.f32 %v4826_v52, %v3489_v47  ;;  %v4742_v59 = vpop.f32.mrb[14].mxu1  ;;  %v4828_v60 = vpop.f32.mrb[14].mxu0  ;;  %v3500_v51 = vsub.s32 6, %v7825_v19 }
 0x5ab   : > { %v5001_v22 = vsub.f32 0.0, %v5866_v55  ;;  %v5003_v61 = vsub.f32 0.0, %v5870_v50  ;;  %v5868_v62 = vadd.f32 %v4742_v59, %v3477_v44  ;;  %v5872_v23 = vadd.f32 %v4828_v60, %v3485_v45  ;;  %v4744_v63 = vpop.f32.mrb[15].mxu1  ;;  %v4830_v0 = vpop.f32.mrb[15].mxu0 }
 0x5ac   : > { %v5002_v25 = vsub.f32 0.0, %v5867_v53  ;;  %v5004_v1 = vsub.f32 0.0, %v5871_v58  ;;  %v5869_v2 = vadd.f32 %v4744_v63, %v3481_v46  ;;  %v5873_v26 = vadd.f32 %v4830_v0, %v3489_v47 }
 0x5ad   : > { %v5015_v3 = vmul.f32 1.442695, %v5001_v22  ;;  %v5019_v4 = vmul.f32 1.442695, %v5003_v61  ;;  %v5008_v5 = vsub.f32 0.0, %v5868_v62  ;;  %v5010_v6 = vsub.f32 0.0, %v5872_v23 }
 0x5ae   : > { %v5017_v7 = vmul.f32 1.442695, %v5002_v25  ;;  %v5021_v8 = vmul.f32 1.442695, %v5004_v1  ;;  %v5009_v9 = vsub.f32 0.0, %v5869_v2  ;;  %v5011_v10 = vsub.f32 0.0, %v5873_v26 }
 0x5af   : > { %6817 = vpow2.f32 %v5015_v3  ;;  %v5029_v11 = vmul.f32 1.442695, %v5008_v5  ;;  %v5033_v56 = vmul.f32 1.442695, %v5010_v6  ;;  %v3501_v52 = vrot.slane %v8877_v43, %v3500_v51 }
 0x5b0   : > { %6819 = vpow2.f32 %v5019_v4  ;;  %v5031_v12 = vmul.f32 1.442695, %v5009_v9  ;;  %v5035_v13 = vmul.f32 1.442695, %v5011_v10 }
 0x5b1   : > { %6821 = vpow2.f32 %v5017_v7 }
 0x5b2   : > { %6823 = vpow2.f32 %v5021_v8 }
 0x5b3   : > { %6825 = vpow2.f32 %v5029_v11  ;;  %v3492_v11 = vsub.s32 4, %v7825_v19 }
 0x5b4   : > { %6827 = vpow2.f32 %v5033_v56  ;;  %v3496_v56 = vsub.s32 5, %v7825_v19 }
 0x5b5   : > { %6829 = vpow2.f32 %v5031_v12  ;;  %v3493_v12 = vrot.slane %v8877_v43, %v3492_v11 }
 0x5b6   : > { %6831 = vpow2.f32 %v5035_v13  ;;  %v3497_v13 = vrot.slane %v8877_v43, %v3496_v56 }
 0x5b9   : > { %v6818_v54 = vpop.eup %6817 }
 0x5ba   : > { %v6820_v57 = vpop.eup %6819  ;;  %v5043_v14 = vadd.f32 1.0, %v6818_v54 }
 0x5bb   : > { %v6822_v15 = vpop.eup %6821  ;;  %v5045_v16 = vadd.f32 1.0, %v6820_v57 }
 0x5bc   : > { %v6824_v17 = vpop.eup %6823  ;;  %6833 = vrcp.f32 %v5043_v14  ;;  %v5044_v18 = vadd.f32 1.0, %v6822_v15 }
 0x5bd   : > { %v6826_v20 = vpop.eup %6825  ;;  %6835 = vrcp.f32 %v5045_v16  ;;  %v5046_v21 = vadd.f32 1.0, %v6824_v17 }
 0x5be   : > { %v6828_v24 = vpop.eup %6827  ;;  %6837 = vrcp.f32 %v5044_v18  ;;  %v5050_v27 = vadd.f32 1.0, %v6826_v20 }
 0x5bf   : > { %v6830_v28 = vpop.eup %6829  ;;  %6839 = vrcp.f32 %v5046_v21  ;;  %v5052_v29 = vadd.f32 1.0, %v6828_v24 }
 0x5c0   : > { %v6832_v30 = vpop.eup %6831  ;;  %6841 = vrcp.f32 %v5050_v27  ;;  %v5051_v31 = vadd.f32 1.0, %v6830_v28 }
 0x5c1   : > { %6843 = vrcp.f32 %v5052_v29  ;;  %v5053_v32 = vadd.f32 1.0, %v6832_v30 }
 0x5c2   : > { %6845 = vrcp.f32 %v5051_v31 }
 0x5c3   : > { %6847 = vrcp.f32 %v5053_v32 }
 0x5c6   : > { %v6834_v33 = vpop.eup %6833 }
 0x5c7   : > { %v6836_v34 = vpop.eup %6835 }
 0x5c8   : > { %v6838_v35 = vpop.eup %6837 }
 0x5c9   : > { %v6840_v36 = vpop.eup %6839  ;;  %v5802_v37 = vpack.c.bf16 %v6838_v35, %v6834_v33  ;;  %v5826_v38 = vpop.f32.mrb[16].mxu0 }
 0x5ca   : > { %v6842_v39 = vpop.eup %6841  ;;  %v5803_v40 = vpack.c.bf16 %v6840_v36, %v6836_v34  ;;  %v5827_v41 = vpop.f32.mrb[17].mxu0 }
 0x5cb   : > { %v6844_v42 = vpop.eup %6843  ;;  %5115 = vst [vmem:[%s8890_s0] sm:$0xff] %v5802_v37  ;;  %v5828_v44 = vadd.f32 %v5827_v41, %v5826_v38  ;;  %v5829_v45 = vpop.f32.mrb[18].mxu0 }
 0x5cc   : > { %v6846_v46 = vpop.eup %6845  ;;  %5116 = vst [vmem:[%s8890_s0 + $0x8] sm:$0xff] %v5803_v40  ;;  %v5830_v47 = vpop.f32.mrb[19].mxu0 }
 0x5cd   : > { %v6848_v48 = vpop.eup %6847  ;;  %v5806_v49 = vpack.c.bf16 %v6846_v46, %v6842_v39  ;;  %v5831_v55 = vadd.f32 %v5830_v47, %v5829_v45  ;;  %v4954_v59 = vadd.f32 %v5828_v44, %v3501_v52 }
 0x5ce   : > { %v5807_v50 = vpack.c.bf16 %v6848_v48, %v6844_v42 }
 0x5cf   : > { %5120 = vst [vmem:[%s8890_s0 + $0x1c] sm:$0xff] %v5806_v49  ;;  %v4957_v62 = vadd.f32 %v5831_v55, %v3501_v52 }
 0x5d0   : > { %5121 = vst [vmem:[%s8890_s0 + $0x24] sm:$0xff] %v5807_v50 }
 0x5e9   : > { %v5848_v53 = vpop.f32.mrb[20].mxu0 }
 0x5ea   : > { %v5849_v58 = vpop.f32.mrb[21].mxu0 }
 0x5eb   : > { %v5850_v60 = vadd.f32 %v5849_v58, %v5848_v53  ;;  %v5851_v22 = vpop.f32.mrb[22].mxu0 }
 0x5ec   : > { %v5852_v61 = vpop.f32.mrb[23].mxu0 }
 0x5ed   : > { %v4995_v23 = vadd.f32 %v5850_v60, %v4954_v59  ;;  %v5853_v63 = vadd.f32 %v5852_v61, %v5851_v22 }
 0x5ef   : > { %v5007_v0 = vsub.f32 0.0, %v4995_v23  ;;  %v4998_v25 = vadd.f32 %v5853_v63, %v4957_v62 }
 0x5f1   : > { %v5027_v1 = vmul.f32 1.442695, %v5007_v0  ;;  %v5014_v2 = vsub.f32 0.0, %v4998_v25 }
 0x5f3   : > { %6849 = vpow2.f32 %v5027_v1  ;;  %v5041_v26 = vmul.f32 1.442695, %v5014_v2 }
 0x5f5   : > { %6851 = vpow2.f32 %v5041_v26 }
 0x5fd   : > { %v6850_v3 = vpop.eup %6849 }
 0x5fe   : > { %v5049_v4 = vadd.f32 1.0, %v6850_v3 }
 0x5ff   : > { %v6852_v5 = vpop.eup %6851 }
 0x600   : > { %6853 = vrcp.f32 %v5049_v4  ;;  %v5056_v6 = vadd.f32 1.0, %v6852_v5 }
 0x602   : > { %6855 = vrcp.f32 %v5056_v6 }
 0x60a   : > { %v6854_v7 = vpop.eup %6853 }
 0x60b   : > { %v5805_v8 = vpack.c.bf16 %v6854_v7, %v6854_v7 }
 0x60c   : > { %v6856_v9 = vpop.eup %6855 }
 0x60d   : > { %5119 = vst.msk [vmem:[%s8890_s0 + $0x18] sm:$0xf] %vm5118_vm1, %v5805_v8  ;;  %v5809_v10 = vpack.c.bf16 %v6856_v9, %v6856_v9 }
 0x60f   : > { %5123 = vst.msk [vmem:[%s8890_s0 + $0x34] sm:$0xf] %vm5118_vm1, %v5809_v10 }
 0x628   : > { %v4910_v54 = vpop.f32.mrb[16].mxu1 }
 0x629   : > { %v5874_v57 = vadd.f32 %v4910_v54, %v3493_v12  ;;  %v4912_v14 = vpop.f32.mrb[17].mxu1 }
 0x62a   : > { %v5875_v15 = vadd.f32 %v4912_v14, %v3497_v13  ;;  %v4914_v16 = vpop.f32.mrb[18].mxu1 }
 0x62b   : > { %v5005_v17 = vsub.f32 0.0, %v5874_v57  ;;  %v5876_v18 = vadd.f32 %v4914_v16, %v3493_v12  ;;  %v4916_v20 = vpop.f32.mrb[19].mxu1 }
 0x62c   : > { %v5006_v21 = vsub.f32 0.0, %v5875_v15  ;;  %v5877_v24 = vadd.f32 %v4916_v20, %v3497_v13 }
 0x62d   : > { %v5023_v27 = vmul.f32 1.442695, %v5005_v17  ;;  %v5012_v28 = vsub.f32 0.0, %v5876_v18 }
 0x62e   : > { %v5025_v29 = vmul.f32 1.442695, %v5006_v21  ;;  %v5013_v30 = vsub.f32 0.0, %v5877_v24 }
 0x62f   : > { %6857 = vpow2.f32 %v5023_v27  ;;  %v5037_v19 = vmul.f32 1.442695, %v5012_v28 }
 0x630   : > { %6859 = vpow2.f32 %v5025_v29  ;;  %v5039_v31 = vmul.f32 1.442695, %v5013_v30 }
 0x631   : > { %6861 = vpow2.f32 %v5037_v19 }
 0x632   : > { %6863 = vpow2.f32 %v5039_v31 }
 0x639   : > { %v6858_v43 = vpop.eup %6857 }
 0x63a   : > { %v6860_v32 = vpop.eup %6859  ;;  %v5047_v33 = vadd.f32 1.0, %v6858_v43 }
 0x63b   : > { %v6862_v34 = vpop.eup %6861  ;;  %v5048_v35 = vadd.f32 1.0, %v6860_v32 }
 0x63c   : > { %v6864_v36 = vpop.eup %6863  ;;  %6865 = vrcp.f32 %v5047_v33  ;;  %v5054_v37 = vadd.f32 1.0, %v6862_v34 }
 0x63d   : > { %6867 = vrcp.f32 %v5048_v35  ;;  %v5055_v38 = vadd.f32 1.0, %v6864_v36 }
 0x63e   : > { %6869 = vrcp.f32 %v5054_v37 }
 0x63f   : > { %6871 = vrcp.f32 %v5055_v38 }
 0x646   : > { %v6866_v39 = vpop.eup %6865 }
 0x647   : > { %v6868_v40 = vpop.eup %6867 }
 0x648   : > { %v6870_v41 = vpop.eup %6869  ;;  %v5804_v42 = vpack.c.bf16 %v6868_v40, %v6866_v39 }
 0x649   : > { %v6872_v44 = vpop.eup %6871 }
 0x64a   : > { %5117 = vst [vmem:[%s8890_s0 + $0x10] sm:$0xff] %v5804_v42  ;;  %v5808_v45 = vpack.c.bf16 %v6872_v44, %v6870_v41 }
 0x64c   : > { %5122 = vst [vmem:[%s8890_s0 + $0x2c] sm:$0xff] %v5808_v45 }
 0x64d   : > { %6886 = shalt.err (!%p6883_p3)
}
 0x64e   : > { %s6887_s19 = scalar_lea.hbm %s8912_s16, 896  ;;  %s6891_s0 = scalar_lea.hbm %s8969_s11, 1792 }
 0x64f   : > { %p6888_p4 = scmp.ne.s32.totalorder %s8912_s16, %s6887_s19  ;;  %p6892_p9 = scmp.lt.u32.totalorder %s8912_s16, %s8969_s11 }
 0x650   : > { %p6893_p10 = scmp.lt.u32.totalorder %s6891_s0, %s6887_s19  ;;  %p6895_p12 = scmp.lt.u32.totalorder %s6887_s19, %s8912_s16 }
 0x651   : > { %p6889_p7 = pnand %p6888_p4, %p7039_p5 }
 0x652   : > { %p6894_p11 = por %p6893_p10, %p6892_p9 }
 0x653   : > { %p6890_p8 = pneg %p6889_p7 }
 0x654   : > { %p6896_p13 = por %p6895_p12, %p6894_p11 }
 0x656   : > { %p6897_p0 = pnand %p6896_p13, %p6890_p8 }
 0x658   : > { %6900 = shalt.err (!%p6897_p0)
}
 0x659   : > { %s6939_s29 = smov 448   ;;  %s6940_s22 = smov 28  }
 0x65a   : > { %5921 = dma.vmem_to_hbm [thread:$0]  (%p7039_p5), %s8906_s14, 896, %s8912_s16, %s8917_s21, %s6939_s29, %s6939_s29, %s6940_s22  }
 0x65b PF: > { %p5927_p1 = scmp.ge.s32.totalorder %s6935_s20, 2  ;;  %s5154_s24 = sand.u32 1, %s6923_s17  }
 0x65c   : > { %s5155_s25 = scalar_lea.sflag [#allocation3], %s5154_s24 }
 0x65d   : > { %p5924_p2 = pnand %p5927_p1, %p7043_p6 }
 0x65f   : > { %6918 = dma.done.wait (!%p5924_p2), %s5155_s25, 896  }
 0x660   : > { %6920 = vsyncadd (!%p5924_p2), %s5155_s25, 4294966400  ;;  %s8977_s26 = sld [smem:[#allocation5_spill]]  ;;  %s8978_s19 = sld [smem:[#allocation6_spill]] }
 0x661   : > { %p21_p3 = scmp.ge.s32.totalorder %s7026_s23, 4   ;;  %s8979_s17 = smov %s6927_s18 }
 0x662   : > { %s8981_s20 = smov %s7026_s23 }
 0x663   :  { %23 = sbr.rel (!%p21_p3) target bundleno = 5 (0x5), region = 99 }
 0x666   : > { %s8980_s18 = smov %s8977_s26 }
 0x66a   :  { %5160 = vsyncpa [#allocation3], 1 }
 0x66b   :  { %5162 = vsyncpa [#allocation3 + $0x1], 1 }

</bundles_post_ra>
